<compile_context>
chip_gen: v7x
topology: tpu7x:2x2x1
jax: 0.10.0
libtpu: 0.0.40
codegen_flags: <defaults>
</compile_context>

<pallas_src>
import functools
import math

import jax
import jax.numpy as jnp
from jax.experimental import pallas as pl
from jax.experimental.pallas import tpu as pltpu

_EPS = 1e-5

_ENC_KEYS = ("wq", "bq", "wk", "bk", "wv", "bv", "wo", "bo",
             "ln1_g", "ln1_b", "w1", "b1", "w2", "b2", "ln2_g", "ln2_b")


# --------------------------------------------------------------------------- #
# In-kernel building blocks (operate on loaded VMEM values)
# --------------------------------------------------------------------------- #
def _layernorm(x, g, b, eps):
    mu = jnp.mean(x, axis=-1, keepdims=True)
    xc = x - mu
    var = jnp.mean(xc * xc, axis=-1, keepdims=True)
    return xc * jax.lax.rsqrt(var + eps) * g + b


def _attention(x, w, n_heads):
    """Scaled-dot-product MHA on a (S, D) f32 tile (residual NOT included).

    TODO(synk): AttentionLayer's source is not provided; standard unmasked
    multi-head self-attention with Q/K/V/out projections is assumed.
    """
    S, D = x.shape
    dk = D // n_heads
    cdt = w["wq"].dtype                       # bf16 MXU inputs, f32 accumulation

    xc = x.astype(cdt)
    q = jnp.dot(xc, w["wq"], preferred_element_type=jnp.float32) + w["bq"]
    k = jnp.dot(xc, w["wk"], preferred_element_type=jnp.float32) + w["bk"]
    v = jnp.dot(xc, w["wv"], preferred_element_type=jnp.float32) + w["bv"]
    q = q * (1.0 / math.sqrt(dk))             # fold softmax scale into q once

    out = None
    for h in range(n_heads):                  # small static head count
        sl = slice(h * dk, (h + 1) * dk)
        qh = q[:, sl].astype(cdt)
        kh = k[:, sl].astype(cdt)
        vh = v[:, sl].astype(cdt)
        # q @ k^T without materializing a transpose.
        s = jax.lax.dot_general(qh, kh, (((1,), (1,)), ((), ())),
                                preferred_element_type=jnp.float32)
        s = s - jnp.max(s, axis=-1, keepdims=True)
        p = jnp.exp(s)
        # divide -> EUP approx reciprocal (frees the VALU slot alongside exp)
        p = p * pl.reciprocal(jnp.sum(p, axis=-1, keepdims=True), approx=True)
        ctx = jnp.dot(p.astype(cdt), vh, preferred_element_type=jnp.float32)
        # Fold the head straight into the output projection (ctx_h @ Wo[rows_h]);
        # avoids the lane-concatenate of all head contexts.
        part = jnp.dot(ctx.astype(cdt), w["wo"][sl, :],
                       preferred_element_type=jnp.float32)
        out = part if out is None else out + part
    return out + w["bo"]


def _encoder_body(x, w, n_heads, eps):
    """One EncoderLayer (inference): x + MHA -> LN1 -> conv1/GELU/conv2 -> +res -> LN2."""
    x = x + _attention(x, w, n_heads)
    x1 = _layernorm(x, w["ln1_g"], w["ln1_b"], eps)
    cdt = w["w1"].dtype
    h = jnp.dot(x1.astype(cdt), w["w1"], preferred_element_type=jnp.float32) + w["b1"]
    # TODO(synk): PyTorch F.gelu defaults to the exact erf form; tanh approximation used.
    h = jax.nn.gelu(h, approximate=True)
    y = jnp.dot(h.astype(cdt), w["w2"], preferred_element_type=jnp.float32) + w["b2"]
    return _layernorm(x1 + y, w["ln2_g"], w["ln2_b"], eps)


# --------------------------------------------------------------------------- #
# Fused kernel: whole SpatioTemporalEncoderLayerSerial for one batch element
# --------------------------------------------------------------------------- #
def _fused_st_kernel(*refs, n_heads, eps):
    """refs: x_ref, 16 temporal params, 16 spatio params, norm_g, norm_b, o_ref."""
    nk = len(_ENC_KEYS)
    x_ref, o_ref = refs[0], refs[-1]
    wt = dict(zip(_ENC_KEYS, (r[...] for r in refs[1:1 + nk])))
    ws = dict(zip(_ENC_KEYS, (r[...] for r in refs[1 + nk:1 + 2 * nk])))
    g, b = refs[-3][...], refs[-2][...]

    x = x_ref[...].astype(jnp.float32)             # (L, C)
    x_t = _encoder_body(x, wt, n_heads, eps)       # temporal branch, d_model = C
    # spatio branch on the in-VMEM transpose (no HBM swapaxes round trip)
    x_s = _encoder_body(x.T, ws, n_heads, eps)     # (C, L), d_model = L
    z = x_t + x_s.T                                # back to (L, C)
    o_ref[...] = _layernorm(z, g, b, eps).astype(o_ref.dtype)


# --------------------------------------------------------------------------- #
# Wrapper
# --------------------------------------------------------------------------- #
def _vmem_limit_bytes():
    """~70% of physical VMEM, capped at 48 MiB so one setting is legal on
    v5e/v6e (128 MiB) and v7x (64 MiB per TensorCore)."""
    try:
        cap = int(pltpu.get_tpu_info().vmem_capacity_bytes)
    except Exception:
        cap = 64 << 20
    return max(32 << 20, min(int(cap * 0.7), 48 << 20))


def spatio_temporal_forward(x, params, n_heads, eps=_EPS):
    """SpatioTemporalEncoderLayerSerial.forward. x: (N, win_size, input_c)."""
    N, L, C = x.shape
    assert C % n_heads == 0 and L % n_heads == 0
    pt, ps = params["temporal"], params["spatio"]
    t_args = [pt[k] for k in _ENC_KEYS]
    s_args = [ps[k] for k in _ENC_KEYS]
    F = pt["w1"].shape[1]

    def full_spec(a):
        nd = a.ndim

        def imap(bi):
            return (0,) * nd
        return pl.BlockSpec(a.shape, imap)

    x_spec = pl.BlockSpec((None, L, C), lambda bi: (bi, 0, 0))
    in_specs = ([x_spec]
                + [full_spec(a) for a in t_args + s_args]
                + [full_spec(params["norm_g"]), full_spec(params["norm_b"])])

    # Advisory cost model for the XLA scheduler.
    def enc_flops(S, D):
        return 2 * S * D * (4 * D + 2 * S) + 4 * S * D * F
    flops = N * (enc_flops(L, C) + enc_flops(C, L) + 9 * L * C)
    transcendentals = N * (n_heads * (L * L + C * C) + F * (L + C))
    weight_bytes = sum(int(a.size) * a.dtype.itemsize
                       for a in t_args + s_args
                       + [params["norm_g"], params["norm_b"]])
    bytes_accessed = 2 * N * L * C * x.dtype.itemsize + weight_bytes

    return pl.pallas_call(
        functools.partial(_fused_st_kernel, n_heads=n_heads, eps=eps),
        out_shape=jax.ShapeDtypeStruct((N, L, C), x.dtype),
        grid=(N,),
        in_specs=in_specs,
        out_specs=pl.BlockSpec((None, L, C), lambda bi: (bi, 0, 0)),
        compiler_params=pltpu.CompilerParams(
            dimension_semantics=("parallel",),
            vmem_limit_bytes=_vmem_limit_bytes()),
        cost_estimate=pl.CostEstimate(flops=int(flops),
                                      transcendentals=int(transcendentals),
                                      bytes_accessed=int(bytes_accessed)),
    )(x, *t_args, *s_args, params["norm_g"], params["norm_b"])


# --------------------------------------------------------------------------- #
# Pure-JAX reference (mirrors the kernel's bf16 matmul inputs / f32 accumulation)
# --------------------------------------------------------------------------- #
def _ref_layernorm(x, g, b, eps=_EPS):
    mu = jnp.mean(x, axis=-1, keepdims=True)
    var = jnp.mean((x - mu) ** 2, axis=-1, keepdims=True)
    return (x - mu) * jax.lax.rsqrt(var + eps) * g + b


def _ref_attention(x, w, n_heads):
    B, S, D = x.shape
    dk = D // n_heads
    cdt = w["wq"].dtype
    f32 = jnp.float32
    xc = x.astype(cdt)
    q = jnp.einsum("bsd,de->bse", xc, w["wq"], preferred_element_type=f32) + w["bq"]
    k = jnp.einsum("bsd,de->bse", xc, w["wk"], preferred_element_type=f32) + w["bk"]
    v = jnp.einsum("bsd,de->bse", xc, w["wv"], preferred_element_type=f32) + w["bv"]
    q = q * (1.0 / math.sqrt(dk))
    qh = q.reshape(B, S, n_heads, dk).transpose(0, 2, 1, 3).astype(cdt)
    kh = k.reshape(B, S, n_heads, dk).transpose(0, 2, 1, 3).astype(cdt)
    vh = v.reshape(B, S, n_heads, dk).transpose(0, 2, 1, 3).astype(cdt)
    s = jnp.einsum("bhqd,bhkd->bhqk", qh, kh, preferred_element_type=f32)
    p = jax.nn.softmax(s, axis=-1)
    ctx = jnp.einsum("bhqk,bhkd->bhqd", p.astype(cdt), vh, preferred_element_type=f32)
    ctx = ctx.transpose(0, 2, 1, 3).reshape(B, S, D)
    return jnp.einsum("bsd,de->bse", ctx.astype(cdt), w["wo"],
                      preferred_element_type=f32) + w["bo"]


def _ref_encoder(x, w, n_heads, eps=_EPS):
    f32 = jnp.float32
    cdt = w["w1"].dtype
    x = x + _ref_attention(x, w, n_heads)
    x1 = _ref_layernorm(x, w["ln1_g"], w["ln1_b"], eps)
    h = jnp.einsum("bsd,df->bsf", x1.astype(cdt), w["w1"],
                   preferred_element_type=f32) + w["b1"]
    h = jax.nn.gelu(h, approximate=True)
    y = jnp.einsum("bsf,fd->bsd", h.astype(cdt), w["w2"],
                   preferred_element_type=f32) + w["b2"]
    return _ref_layernorm(x1 + y, w["ln2_g"], w["ln2_b"], eps)


def _ref_forward(x, params, n_heads):
    x_t = _ref_encoder(x, params["temporal"], n_heads)
    x_s = _ref_encoder(jnp.swapaxes(x, 1, 2), params["spatio"], n_heads)
    return _ref_layernorm(jnp.swapaxes(x_s, 1, 2) + x_t,
                          params["norm_g"], params["norm_b"])


# --------------------------------------------------------------------------- #
# Parameter init (mimics PyTorch defaults; weights stored bf16 for the MXU)
# --------------------------------------------------------------------------- #
def init_encoder_layer_params(key, d_model, d_ff, weight_dtype=jnp.bfloat16):
    ks = jax.random.split(key, 16)

    def lin(kk, fan_in, shape, dtype=jnp.float32):
        bound = 1.0 / math.sqrt(fan_in)
        w = jax.random.uniform(kk, shape, minval=-bound, maxval=bound,
                               dtype=jnp.float32)
        return w.astype(dtype)

    def affine(kg, kb, dim):
        g = 1.0 + 0.1 * jax.random.normal(kg, (1, dim), dtype=jnp.float32)
        b = 0.1 * jax.random.normal(kb, (1, dim), dtype=jnp.float32)
        return g, b

    ln1_g, ln1_b = affine(ks[12], ks[13], d_model)
    ln2_g, ln2_b = affine(ks[14], ks[15], d_model)
    return {
        "wq": lin(ks[0], d_model, (d_model, d_model), weight_dtype),
        "bq": lin(ks[1], d_model, (1, d_model)),
        "wk": lin(ks[2], d_model, (d_model, d_model), weight_dtype),
        "bk": lin(ks[3], d_model, (1, d_model)),
        "wv": lin(ks[4], d_model, (d_model, d_model), weight_dtype),
        "bv": lin(ks[5], d_model, (1, d_model)),
        "wo": lin(ks[6], d_model, (d_model, d_model), weight_dtype),
        "bo": lin(ks[7], d_model, (1, d_model)),
        "w1": lin(ks[8], d_model, (d_model, d_ff), weight_dtype),
        "b1": lin(ks[9], d_model, (1, d_ff)),
        "w2": lin(ks[10], d_ff, (d_ff, d_model), weight_dtype),
        "b2": lin(ks[11], d_ff, (1, d_model)),
        "ln1_g": ln1_g, "ln1_b": ln1_b,
        "ln2_g": ln2_g, "ln2_b": ln2_b,
    }


if __name__ == "__main__":
    # x : (N, win_size, input_c)
    N, win_size, input_c = 2, 16, 8
    n_heads, d_ff = 2, 32

    key = jax.random.PRNGKey(0)
    k_x, k_sp, k_tm, k_ng, k_nb = jax.random.split(key, 5)

    x = jax.random.normal(k_x, (N, win_size, input_c), dtype=jnp.float32)
    params = {
        # encoder_layer  : operates on x.transpose(-1,1), d_model = win_size
        "spatio": init_encoder_layer_params(k_sp, d_model=win_size, d_ff=d_ff),
        # encoder_layer2 : operates on x directly, d_model = input_c
        "temporal": init_encoder_layer_params(k_tm, d_model=input_c, d_ff=d_ff),
        "norm_g": 1.0 + 0.1 * jax.random.normal(k_ng, (1, input_c), dtype=jnp.float32),
        "norm_b": 0.1 * jax.random.normal(k_nb, (1, input_c), dtype=jnp.float32),
    }

    fwd = jax.jit(functools.partial(spatio_temporal_forward, n_heads=n_heads))
    out = jax.block_until_ready(fwd(x, params))

    ref = _ref_forward(x, params, n_heads)
    assert out.shape == (N, win_size, input_c)
    err = float(jnp.max(jnp.abs(out - ref)))
    # bf16 MXU inputs are mirrored in the reference; residual error comes mainly
    # from the approximate softmax reciprocal.
    assert err < 1e-2, err

    print("KERNEL_OK")
</pallas_src>

<mosaic_0001>
module attributes {stable_mosaic.version = 11 : i64} {
  func.func @_fused_st_kernel(%arg0: i32, %arg1: memref<1x16x8xf32, #tpu.memory_space<vmem>>, %arg2: memref<8x8xbf16, #tpu.memory_space<vmem>>, %arg3: memref<1x8xf32, #tpu.memory_space<vmem>>, %arg4: memref<8x8xbf16, #tpu.memory_space<vmem>>, %arg5: memref<1x8xf32, #tpu.memory_space<vmem>>, %arg6: memref<8x8xbf16, #tpu.memory_space<vmem>>, %arg7: memref<1x8xf32, #tpu.memory_space<vmem>>, %arg8: memref<8x8xbf16, #tpu.memory_space<vmem>>, %arg9: memref<1x8xf32, #tpu.memory_space<vmem>>, %arg10: memref<1x8xf32, #tpu.memory_space<vmem>>, %arg11: memref<1x8xf32, #tpu.memory_space<vmem>>, %arg12: memref<8x32xbf16, #tpu.memory_space<vmem>>, %arg13: memref<1x32xf32, #tpu.memory_space<vmem>>, %arg14: memref<32x8xbf16, #tpu.memory_space<vmem>>, %arg15: memref<1x8xf32, #tpu.memory_space<vmem>>, %arg16: memref<1x8xf32, #tpu.memory_space<vmem>>, %arg17: memref<1x8xf32, #tpu.memory_space<vmem>>, %arg18: memref<16x16xbf16, #tpu.memory_space<vmem>>, %arg19: memref<1x16xf32, #tpu.memory_space<vmem>>, %arg20: memref<16x16xbf16, #tpu.memory_space<vmem>>, %arg21: memref<1x16xf32, #tpu.memory_space<vmem>>, %arg22: memref<16x16xbf16, #tpu.memory_space<vmem>>, %arg23: memref<1x16xf32, #tpu.memory_space<vmem>>, %arg24: memref<16x16xbf16, #tpu.memory_space<vmem>>, %arg25: memref<1x16xf32, #tpu.memory_space<vmem>>, %arg26: memref<1x16xf32, #tpu.memory_space<vmem>>, %arg27: memref<1x16xf32, #tpu.memory_space<vmem>>, %arg28: memref<16x32xbf16, #tpu.memory_space<vmem>>, %arg29: memref<1x32xf32, #tpu.memory_space<vmem>>, %arg30: memref<32x16xbf16, #tpu.memory_space<vmem>>, %arg31: memref<1x16xf32, #tpu.memory_space<vmem>>, %arg32: memref<1x16xf32, #tpu.memory_space<vmem>>, %arg33: memref<1x16xf32, #tpu.memory_space<vmem>>, %arg34: memref<1x8xf32, #tpu.memory_space<vmem>>, %arg35: memref<1x8xf32, #tpu.memory_space<vmem>>, %arg36: memref<1x16x8xf32, #tpu.memory_space<vmem>>) attributes {dimension_semantics = [#tpu.dimension_semantics<parallel>], iteration_bounds = array<i64: 2>, scalar_prefetch = 0 : i64, scratch_operands = 0 : i64, tpu.core_type = #tpu.core_type<tc>, window_params = [{transform_indices = @transform_0, window_bounds = array<i64: 1, 16, 8>}, {pipeline_mode = #tpu.pipeline_mode<synchronous>, transform_indices = @transform_1, window_bounds = array<i64: 8, 8>}, {pipeline_mode = #tpu.pipeline_mode<synchronous>, transform_indices = @transform_2, window_bounds = array<i64: 1, 8>}, {pipeline_mode = #tpu.pipeline_mode<synchronous>, transform_indices = @transform_3, window_bounds = array<i64: 8, 8>}, {pipeline_mode = #tpu.pipeline_mode<synchronous>, transform_indices = @transform_4, window_bounds = array<i64: 1, 8>}, {pipeline_mode = #tpu.pipeline_mode<synchronous>, transform_indices = @transform_5, window_bounds = array<i64: 8, 8>}, {pipeline_mode = #tpu.pipeline_mode<synchronous>, transform_indices = @transform_6, window_bounds = array<i64: 1, 8>}, {pipeline_mode = #tpu.pipeline_mode<synchronous>, transform_indices = @transform_7, window_bounds = array<i64: 8, 8>}, {pipeline_mode = #tpu.pipeline_mode<synchronous>, transform_indices = @transform_8, window_bounds = array<i64: 1, 8>}, {pipeline_mode = #tpu.pipeline_mode<synchronous>, transform_indices = @transform_9, window_bounds = array<i64: 1, 8>}, {pipeline_mode = #tpu.pipeline_mode<synchronous>, transform_indices = @transform_10, window_bounds = array<i64: 1, 8>}, {pipeline_mode = #tpu.pipeline_mode<synchronous>, transform_indices = @transform_11, window_bounds = array<i64: 8, 32>}, {pipeline_mode = #tpu.pipeline_mode<synchronous>, transform_indices = @transform_12, window_bounds = array<i64: 1, 32>}, {pipeline_mode = #tpu.pipeline_mode<synchronous>, transform_indices = @transform_13, window_bounds = array<i64: 32, 8>}, {pipeline_mode = #tpu.pipeline_mode<synchronous>, transform_indices = @transform_14, window_bounds = array<i64: 1, 8>}, {pipeline_mode = #tpu.pipeline_mode<synchronous>, transform_indices = @transform_15, window_bounds = array<i64: 1, 8>}, {pipeline_mode = #tpu.pipeline_mode<synchronous>, transform_indices = @transform_16, window_bounds = array<i64: 1, 8>}, {pipeline_mode = #tpu.pipeline_mode<synchronous>, transform_indices = @transform_17, window_bounds = array<i64: 16, 16>}, {pipeline_mode = #tpu.pipeline_mode<synchronous>, transform_indices = @transform_18, window_bounds = array<i64: 1, 16>}, {pipeline_mode = #tpu.pipeline_mode<synchronous>, transform_indices = @transform_19, window_bounds = array<i64: 16, 16>}, {pipeline_mode = #tpu.pipeline_mode<synchronous>, transform_indices = @transform_20, window_bounds = array<i64: 1, 16>}, {pipeline_mode = #tpu.pipeline_mode<synchronous>, transform_indices = @transform_21, window_bounds = array<i64: 16, 16>}, {pipeline_mode = #tpu.pipeline_mode<synchronous>, transform_indices = @transform_22, window_bounds = array<i64: 1, 16>}, {pipeline_mode = #tpu.pipeline_mode<synchronous>, transform_indices = @transform_23, window_bounds = array<i64: 16, 16>}, {pipeline_mode = #tpu.pipeline_mode<synchronous>, transform_indices = @transform_24, window_bounds = array<i64: 1, 16>}, {pipeline_mode = #tpu.pipeline_mode<synchronous>, transform_indices = @transform_25, window_bounds = array<i64: 1, 16>}, {pipeline_mode = #tpu.pipeline_mode<synchronous>, transform_indices = @transform_26, window_bounds = array<i64: 1, 16>}, {pipeline_mode = #tpu.pipeline_mode<synchronous>, transform_indices = @transform_27, window_bounds = array<i64: 16, 32>}, {pipeline_mode = #tpu.pipeline_mode<synchronous>, transform_indices = @transform_28, window_bounds = array<i64: 1, 32>}, {pipeline_mode = #tpu.pipeline_mode<synchronous>, transform_indices = @transform_29, window_bounds = array<i64: 32, 16>}, {pipeline_mode = #tpu.pipeline_mode<synchronous>, transform_indices = @transform_30, window_bounds = array<i64: 1, 16>}, {pipeline_mode = #tpu.pipeline_mode<synchronous>, transform_indices = @transform_31, window_bounds = array<i64: 1, 16>}, {pipeline_mode = #tpu.pipeline_mode<synchronous>, transform_indices = @transform_32, window_bounds = array<i64: 1, 16>}, {pipeline_mode = #tpu.pipeline_mode<synchronous>, transform_indices = @transform_33, window_bounds = array<i64: 1, 8>}, {pipeline_mode = #tpu.pipeline_mode<synchronous>, transform_indices = @transform_34, window_bounds = array<i64: 1, 8>}, {transform_indices = @transform_35, window_bounds = array<i64: 1, 16, 8>}]} {
    %c0 = arith.constant 0 : index
    %c0_0 = arith.constant 0 : index
    %0 = vector.load %arg2[%c0, %c0_0] : memref<8x8xbf16, #tpu.memory_space<vmem>>, vector<8x8xbf16>
    %c0_1 = arith.constant 0 : index
    %c0_2 = arith.constant 0 : index
    %1 = vector.load %arg3[%c0_1, %c0_2] : memref<1x8xf32, #tpu.memory_space<vmem>>, vector<1x8xf32>
    %c0_3 = arith.constant 0 : index
    %c0_4 = arith.constant 0 : index
    %2 = vector.load %arg4[%c0_3, %c0_4] : memref<8x8xbf16, #tpu.memory_space<vmem>>, vector<8x8xbf16>
    %c0_5 = arith.constant 0 : index
    %c0_6 = arith.constant 0 : index
    %3 = vector.load %arg5[%c0_5, %c0_6] : memref<1x8xf32, #tpu.memory_space<vmem>>, vector<1x8xf32>
    %c0_7 = arith.constant 0 : index
    %c0_8 = arith.constant 0 : index
    %4 = vector.load %arg6[%c0_7, %c0_8] : memref<8x8xbf16, #tpu.memory_space<vmem>>, vector<8x8xbf16>
    %c0_9 = arith.constant 0 : index
    %c0_10 = arith.constant 0 : index
    %5 = vector.load %arg7[%c0_9, %c0_10] : memref<1x8xf32, #tpu.memory_space<vmem>>, vector<1x8xf32>
    %c0_11 = arith.constant 0 : index
    %c0_12 = arith.constant 0 : index
    %6 = vector.load %arg8[%c0_11, %c0_12] : memref<8x8xbf16, #tpu.memory_space<vmem>>, vector<8x8xbf16>
    %c0_13 = arith.constant 0 : index
    %c0_14 = arith.constant 0 : index
    %7 = vector.load %arg9[%c0_13, %c0_14] : memref<1x8xf32, #tpu.memory_space<vmem>>, vector<1x8xf32>
    %c0_15 = arith.constant 0 : index
    %c0_16 = arith.constant 0 : index
    %8 = vector.load %arg10[%c0_15, %c0_16] : memref<1x8xf32, #tpu.memory_space<vmem>>, vector<1x8xf32>
    %c0_17 = arith.constant 0 : index
    %c0_18 = arith.constant 0 : index
    %9 = vector.load %arg11[%c0_17, %c0_18] : memref<1x8xf32, #tpu.memory_space<vmem>>, vector<1x8xf32>
    %c0_19 = arith.constant 0 : index
    %c0_20 = arith.constant 0 : index
    %10 = vector.load %arg12[%c0_19, %c0_20] : memref<8x32xbf16, #tpu.memory_space<vmem>>, vector<8x32xbf16>
    %c0_21 = arith.constant 0 : index
    %c0_22 = arith.constant 0 : index
    %11 = vector.load %arg13[%c0_21, %c0_22] : memref<1x32xf32, #tpu.memory_space<vmem>>, vector<1x32xf32>
    %c0_23 = arith.constant 0 : index
    %c0_24 = arith.constant 0 : index
    %12 = vector.load %arg14[%c0_23, %c0_24] : memref<32x8xbf16, #tpu.memory_space<vmem>>, vector<32x8xbf16>
    %c0_25 = arith.constant 0 : index
    %c0_26 = arith.constant 0 : index
    %13 = vector.load %arg15[%c0_25, %c0_26] : memref<1x8xf32, #tpu.memory_space<vmem>>, vector<1x8xf32>
    %c0_27 = arith.constant 0 : index
    %c0_28 = arith.constant 0 : index
    %14 = vector.load %arg16[%c0_27, %c0_28] : memref<1x8xf32, #tpu.memory_space<vmem>>, vector<1x8xf32>
    %c0_29 = arith.constant 0 : index
    %c0_30 = arith.constant 0 : index
    %15 = vector.load %arg17[%c0_29, %c0_30] : memref<1x8xf32, #tpu.memory_space<vmem>>, vector<1x8xf32>
    %c0_31 = arith.constant 0 : index
    %c0_32 = arith.constant 0 : index
    %16 = vector.load %arg18[%c0_31, %c0_32] : memref<16x16xbf16, #tpu.memory_space<vmem>>, vector<16x16xbf16>
    %c0_33 = arith.constant 0 : index
    %c0_34 = arith.constant 0 : index
    %17 = vector.load %arg19[%c0_33, %c0_34] : memref<1x16xf32, #tpu.memory_space<vmem>>, vector<1x16xf32>
    %c0_35 = arith.constant 0 : index
    %c0_36 = arith.constant 0 : index
    %18 = vector.load %arg20[%c0_35, %c0_36] : memref<16x16xbf16, #tpu.memory_space<vmem>>, vector<16x16xbf16>
    %c0_37 = arith.constant 0 : index
    %c0_38 = arith.constant 0 : index
    %19 = vector.load %arg21[%c0_37, %c0_38] : memref<1x16xf32, #tpu.memory_space<vmem>>, vector<1x16xf32>
    %c0_39 = arith.constant 0 : index
    %c0_40 = arith.constant 0 : index
    %20 = vector.load %arg22[%c0_39, %c0_40] : memref<16x16xbf16, #tpu.memory_space<vmem>>, vector<16x16xbf16>
    %c0_41 = arith.constant 0 : index
    %c0_42 = arith.constant 0 : index
    %21 = vector.load %arg23[%c0_41, %c0_42] : memref<1x16xf32, #tpu.memory_space<vmem>>, vector<1x16xf32>
    %c0_43 = arith.constant 0 : index
    %c0_44 = arith.constant 0 : index
    %22 = vector.load %arg24[%c0_43, %c0_44] : memref<16x16xbf16, #tpu.memory_space<vmem>>, vector<16x16xbf16>
    %c0_45 = arith.constant 0 : index
    %c0_46 = arith.constant 0 : index
    %23 = vector.load %arg25[%c0_45, %c0_46] : memref<1x16xf32, #tpu.memory_space<vmem>>, vector<1x16xf32>
    %c0_47 = arith.constant 0 : index
    %c0_48 = arith.constant 0 : index
    %24 = vector.load %arg26[%c0_47, %c0_48] : memref<1x16xf32, #tpu.memory_space<vmem>>, vector<1x16xf32>
    %c0_49 = arith.constant 0 : index
    %c0_50 = arith.constant 0 : index
    %25 = vector.load %arg27[%c0_49, %c0_50] : memref<1x16xf32, #tpu.memory_space<vmem>>, vector<1x16xf32>
    %c0_51 = arith.constant 0 : index
    %c0_52 = arith.constant 0 : index
    %26 = vector.load %arg28[%c0_51, %c0_52] : memref<16x32xbf16, #tpu.memory_space<vmem>>, vector<16x32xbf16>
    %c0_53 = arith.constant 0 : index
    %c0_54 = arith.constant 0 : index
    %27 = vector.load %arg29[%c0_53, %c0_54] : memref<1x32xf32, #tpu.memory_space<vmem>>, vector<1x32xf32>
    %c0_55 = arith.constant 0 : index
    %c0_56 = arith.constant 0 : index
    %28 = vector.load %arg30[%c0_55, %c0_56] : memref<32x16xbf16, #tpu.memory_space<vmem>>, vector<32x16xbf16>
    %c0_57 = arith.constant 0 : index
    %c0_58 = arith.constant 0 : index
    %29 = vector.load %arg31[%c0_57, %c0_58] : memref<1x16xf32, #tpu.memory_space<vmem>>, vector<1x16xf32>
    %c0_59 = arith.constant 0 : index
    %c0_60 = arith.constant 0 : index
    %30 = vector.load %arg32[%c0_59, %c0_60] : memref<1x16xf32, #tpu.memory_space<vmem>>, vector<1x16xf32>
    %c0_61 = arith.constant 0 : index
    %c0_62 = arith.constant 0 : index
    %31 = vector.load %arg33[%c0_61, %c0_62] : memref<1x16xf32, #tpu.memory_space<vmem>>, vector<1x16xf32>
    %c0_63 = arith.constant 0 : index
    %c0_64 = arith.constant 0 : index
    %32 = vector.load %arg34[%c0_63, %c0_64] : memref<1x8xf32, #tpu.memory_space<vmem>>, vector<1x8xf32>
    %c0_65 = arith.constant 0 : index
    %c0_66 = arith.constant 0 : index
    %33 = vector.load %arg35[%c0_65, %c0_66] : memref<1x8xf32, #tpu.memory_space<vmem>>, vector<1x8xf32>
    %c0_67 = arith.constant 0 : index
    %c0_68 = arith.constant 0 : index
    %c0_69 = arith.constant 0 : index
    %34 = vector.load %arg1[%c0_67, %c0_68, %c0_69] : memref<1x16x8xf32, #tpu.memory_space<vmem>>, vector<1x16x8xf32>
    %35 = vector.shape_cast %34 : vector<1x16x8xf32> to vector<16x8xf32>
    %36 = arith.truncf %35 : vector<16x8xf32> to vector<16x8xbf16>
    %cst = arith.constant dense<0.000000e+00> : vector<16x8xf32>
    %37 = tpu.matmul %36, %0, %cst {dimension_numbers = #tpu.dot_dimension_numbers<[1], [0], [0], [1], [0, 0, 1, 1], [], []>} : vector<16x8xbf16>, vector<8x8xbf16>, vector<16x8xf32> -> vector<16x8xf32>
    %38 = vector.broadcast %1 : vector<1x8xf32> to vector<16x8xf32>
    %39 = arith.addf %37, %38 : vector<16x8xf32>
    %cst_70 = arith.constant dense<0.000000e+00> : vector<16x8xf32>
    %40 = tpu.matmul %36, %2, %cst_70 {dimension_numbers = #tpu.dot_dimension_numbers<[1], [0], [0], [1], [0, 0, 1, 1], [], []>} : vector<16x8xbf16>, vector<8x8xbf16>, vector<16x8xf32> -> vector<16x8xf32>
    %41 = vector.broadcast %3 : vector<1x8xf32> to vector<16x8xf32>
    %42 = arith.addf %40, %41 : vector<16x8xf32>
    %cst_71 = arith.constant dense<0.000000e+00> : vector<16x8xf32>
    %43 = tpu.matmul %36, %4, %cst_71 {dimension_numbers = #tpu.dot_dimension_numbers<[1], [0], [0], [1], [0, 0, 1, 1], [], []>} : vector<16x8xbf16>, vector<8x8xbf16>, vector<16x8xf32> -> vector<16x8xf32>
    %44 = vector.broadcast %5 : vector<1x8xf32> to vector<16x8xf32>
    %45 = arith.addf %43, %44 : vector<16x8xf32>
    %cst_72 = arith.constant 5.000000e-01 : f32
    %46 = vector.broadcast %cst_72 : f32 to vector<16x8xf32>
    %47 = arith.mulf %39, %46 : vector<16x8xf32>
    %48 = vector.extract_strided_slice %47 {offsets = [0, 0], sizes = [16, 4], strides = [1, 1]} : vector<16x8xf32> to vector<16x4xf32>
    %49 = arith.truncf %48 : vector<16x4xf32> to vector<16x4xbf16>
    %50 = vector.extract_strided_slice %42 {offsets = [0, 0], sizes = [16, 4], strides = [1, 1]} : vector<16x8xf32> to vector<16x4xf32>
    %51 = arith.truncf %50 : vector<16x4xf32> to vector<16x4xbf16>
    %52 = vector.extract_strided_slice %45 {offsets = [0, 0], sizes = [16, 4], strides = [1, 1]} : vector<16x8xf32> to vector<16x4xf32>
    %53 = arith.truncf %52 : vector<16x4xf32> to vector<16x4xbf16>
    %cst_73 = arith.constant dense<0.000000e+00> : vector<16x16xf32>
    %54 = tpu.matmul %49, %51, %cst_73 {dimension_numbers = #tpu.dot_dimension_numbers<[1], [1], [0], [0], [0, 0, 1, 0], [], []>} : vector<16x4xbf16>, vector<16x4xbf16>, vector<16x16xf32> -> vector<16x16xf32>
    %cst_74 = arith.constant dense<0xFF800000> : vector<16xf32>
    %55 = vector.multi_reduction <maximumf>, %54, %cst_74 [1] : vector<16x16xf32> to vector<16xf32>
    %56 = vector.shape_cast %55 : vector<16xf32> to vector<16x1xf32>
    %57 = vector.broadcast %56 : vector<16x1xf32> to vector<16x16xf32>
    %58 = arith.subf %54, %57 : vector<16x16xf32>
    %59 = math.exp %58 : vector<16x16xf32>
    %cst_75 = arith.constant dense<0.000000e+00> : vector<16xf32>
    %60 = vector.multi_reduction <add>, %59, %cst_75 [1] : vector<16x16xf32> to vector<16xf32>
    %61 = vector.shape_cast %60 : vector<16xf32> to vector<16x1xf32>
    %62 = tpu.reciprocal %61 {approx = true} : vector<16x1xf32> -> vector<16x1xf32>
    %63 = vector.broadcast %62 : vector<16x1xf32> to vector<16x16xf32>
    %64 = arith.mulf %59, %63 : vector<16x16xf32>
    %65 = arith.truncf %64 : vector<16x16xf32> to vector<16x16xbf16>
    %cst_76 = arith.constant dense<0.000000e+00> : vector<16x4xf32>
    %66 = tpu.matmul %65, %53, %cst_76 {dimension_numbers = #tpu.dot_dimension_numbers<[1], [0], [0], [1], [0, 0, 1, 1], [], []>} : vector<16x16xbf16>, vector<16x4xbf16>, vector<16x4xf32> -> vector<16x4xf32>
    %67 = arith.truncf %66 : vector<16x4xf32> to vector<16x4xbf16>
    %68 = vector.extract_strided_slice %6 {offsets = [0, 0], sizes = [4, 8], strides = [1, 1]} : vector<8x8xbf16> to vector<4x8xbf16>
    %cst_77 = arith.constant dense<0.000000e+00> : vector<16x8xf32>
    %69 = tpu.matmul %67, %68, %cst_77 {dimension_numbers = #tpu.dot_dimension_numbers<[1], [0], [0], [1], [0, 0, 1, 1], [], []>} : vector<16x4xbf16>, vector<4x8xbf16>, vector<16x8xf32> -> vector<16x8xf32>
    %70 = vector.extract_strided_slice %47 {offsets = [0, 4], sizes = [16, 4], strides = [1, 1]} : vector<16x8xf32> to vector<16x4xf32>
    %71 = arith.truncf %70 : vector<16x4xf32> to vector<16x4xbf16>
    %72 = vector.extract_strided_slice %42 {offsets = [0, 4], sizes = [16, 4], strides = [1, 1]} : vector<16x8xf32> to vector<16x4xf32>
    %73 = arith.truncf %72 : vector<16x4xf32> to vector<16x4xbf16>
    %74 = vector.extract_strided_slice %45 {offsets = [0, 4], sizes = [16, 4], strides = [1, 1]} : vector<16x8xf32> to vector<16x4xf32>
    %75 = arith.truncf %74 : vector<16x4xf32> to vector<16x4xbf16>
    %cst_78 = arith.constant dense<0.000000e+00> : vector<16x16xf32>
    %76 = tpu.matmul %71, %73, %cst_78 {dimension_numbers = #tpu.dot_dimension_numbers<[1], [1], [0], [0], [0, 0, 1, 0], [], []>} : vector<16x4xbf16>, vector<16x4xbf16>, vector<16x16xf32> -> vector<16x16xf32>
    %cst_79 = arith.constant dense<0xFF800000> : vector<16xf32>
    %77 = vector.multi_reduction <maximumf>, %76, %cst_79 [1] : vector<16x16xf32> to vector<16xf32>
    %78 = vector.shape_cast %77 : vector<16xf32> to vector<16x1xf32>
    %79 = vector.broadcast %78 : vector<16x1xf32> to vector<16x16xf32>
    %80 = arith.subf %76, %79 : vector<16x16xf32>
    %81 = math.exp %80 : vector<16x16xf32>
    %cst_80 = arith.constant dense<0.000000e+00> : vector<16xf32>
    %82 = vector.multi_reduction <add>, %81, %cst_80 [1] : vector<16x16xf32> to vector<16xf32>
    %83 = vector.shape_cast %82 : vector<16xf32> to vector<16x1xf32>
    %84 = tpu.reciprocal %83 {approx = true} : vector<16x1xf32> -> vector<16x1xf32>
    %85 = vector.broadcast %84 : vector<16x1xf32> to vector<16x16xf32>
    %86 = arith.mulf %81, %85 : vector<16x16xf32>
    %87 = arith.truncf %86 : vector<16x16xf32> to vector<16x16xbf16>
    %cst_81 = arith.constant dense<0.000000e+00> : vector<16x4xf32>
    %88 = tpu.matmul %87, %75, %cst_81 {dimension_numbers = #tpu.dot_dimension_numbers<[1], [0], [0], [1], [0, 0, 1, 1], [], []>} : vector<16x16xbf16>, vector<16x4xbf16>, vector<16x4xf32> -> vector<16x4xf32>
    %89 = arith.truncf %88 : vector<16x4xf32> to vector<16x4xbf16>
    %90 = vector.extract_strided_slice %6 {offsets = [4, 0], sizes = [4, 8], strides = [1, 1]} : vector<8x8xbf16> to vector<4x8xbf16>
    %cst_82 = arith.constant dense<0.000000e+00> : vector<16x8xf32>
    %91 = tpu.matmul %89, %90, %cst_82 {dimension_numbers = #tpu.dot_dimension_numbers<[1], [0], [0], [1], [0, 0, 1, 1], [], []>} : vector<16x4xbf16>, vector<4x8xbf16>, vector<16x8xf32> -> vector<16x8xf32>
    %92 = arith.addf %69, %91 : vector<16x8xf32>
    %93 = vector.broadcast %7 : vector<1x8xf32> to vector<16x8xf32>
    %94 = arith.addf %92, %93 : vector<16x8xf32>
    %95 = arith.addf %35, %94 : vector<16x8xf32>
    %cst_83 = arith.constant dense<0.000000e+00> : vector<16xf32>
    %96 = vector.multi_reduction <add>, %95, %cst_83 [1] : vector<16x8xf32> to vector<16xf32>
    %97 = vector.shape_cast %96 : vector<16xf32> to vector<16x1xf32>
    %cst_84 = arith.constant 8.000000e+00 : f32
    %98 = vector.broadcast %cst_84 : f32 to vector<16x1xf32>
    %99 = arith.divf %97, %98 : vector<16x1xf32>
    %100 = vector.broadcast %99 : vector<16x1xf32> to vector<16x8xf32>
    %101 = arith.subf %95, %100 : vector<16x8xf32>
    %102 = arith.mulf %101, %101 : vector<16x8xf32>
    %cst_85 = arith.constant dense<0.000000e+00> : vector<16xf32>
    %103 = vector.multi_reduction <add>, %102, %cst_85 [1] : vector<16x8xf32> to vector<16xf32>
    %104 = vector.shape_cast %103 : vector<16xf32> to vector<16x1xf32>
    %cst_86 = arith.constant 8.000000e+00 : f32
    %105 = vector.broadcast %cst_86 : f32 to vector<16x1xf32>
    %106 = arith.divf %104, %105 : vector<16x1xf32>
    %cst_87 = arith.constant 9.99999974E-6 : f32
    %107 = vector.broadcast %cst_87 : f32 to vector<16x1xf32>
    %108 = arith.addf %106, %107 : vector<16x1xf32>
    %109 = math.rsqrt %108 : vector<16x1xf32>
    %110 = vector.broadcast %109 : vector<16x1xf32> to vector<16x8xf32>
    %111 = arith.mulf %101, %110 : vector<16x8xf32>
    %112 = vector.broadcast %8 : vector<1x8xf32> to vector<16x8xf32>
    %113 = arith.mulf %111, %112 : vector<16x8xf32>
    %114 = vector.broadcast %9 : vector<1x8xf32> to vector<16x8xf32>
    %115 = arith.addf %113, %114 : vector<16x8xf32>
    %116 = arith.truncf %115 : vector<16x8xf32> to vector<16x8xbf16>
    %cst_88 = arith.constant dense<0.000000e+00> : vector<16x32xf32>
    %117 = tpu.matmul %116, %10, %cst_88 {dimension_numbers = #tpu.dot_dimension_numbers<[1], [0], [0], [1], [0, 0, 1, 1], [], []>} : vector<16x8xbf16>, vector<8x32xbf16>, vector<16x32xf32> -> vector<16x32xf32>
    %118 = vector.broadcast %11 : vector<1x32xf32> to vector<16x32xf32>
    %119 = arith.addf %117, %118 : vector<16x32xf32>
    %120 = arith.mulf %119, %119 : vector<16x32xf32>
    %121 = arith.mulf %119, %120 : vector<16x32xf32>
    %cst_89 = arith.constant 4.471500e-02 : f32
    %122 = vector.broadcast %cst_89 : f32 to vector<16x32xf32>
    %123 = arith.mulf %122, %121 : vector<16x32xf32>
    %124 = arith.addf %119, %123 : vector<16x32xf32>
    %cst_90 = arith.constant 0.797884583 : f32
    %125 = vector.broadcast %cst_90 : f32 to vector<16x32xf32>
    %126 = arith.mulf %125, %124 : vector<16x32xf32>
    %127 = math.tanh %126 : vector<16x32xf32>
    %cst_91 = arith.constant 1.000000e+00 : f32
    %128 = vector.broadcast %cst_91 : f32 to vector<16x32xf32>
    %129 = arith.addf %128, %127 : vector<16x32xf32>
    %cst_92 = arith.constant 5.000000e-01 : f32
    %130 = vector.broadcast %cst_92 : f32 to vector<16x32xf32>
    %131 = arith.mulf %130, %129 : vector<16x32xf32>
    %132 = arith.mulf %119, %131 : vector<16x32xf32>
    %133 = arith.truncf %132 : vector<16x32xf32> to vector<16x32xbf16>
    %cst_93 = arith.constant dense<0.000000e+00> : vector<16x8xf32>
    %134 = tpu.matmul %133, %12, %cst_93 {dimension_numbers = #tpu.dot_dimension_numbers<[1], [0], [0], [1], [0, 0, 1, 1], [], []>} : vector<16x32xbf16>, vector<32x8xbf16>, vector<16x8xf32> -> vector<16x8xf32>
    %135 = vector.broadcast %13 : vector<1x8xf32> to vector<16x8xf32>
    %136 = arith.addf %134, %135 : vector<16x8xf32>
    %137 = arith.addf %115, %136 : vector<16x8xf32>
    %cst_94 = arith.constant dense<0.000000e+00> : vector<16xf32>
    %138 = vector.multi_reduction <add>, %137, %cst_94 [1] : vector<16x8xf32> to vector<16xf32>
    %139 = vector.shape_cast %138 : vector<16xf32> to vector<16x1xf32>
    %cst_95 = arith.constant 8.000000e+00 : f32
    %140 = vector.broadcast %cst_95 : f32 to vector<16x1xf32>
    %141 = arith.divf %139, %140 : vector<16x1xf32>
    %142 = vector.broadcast %141 : vector<16x1xf32> to vector<16x8xf32>
    %143 = arith.subf %137, %142 : vector<16x8xf32>
    %144 = arith.mulf %143, %143 : vector<16x8xf32>
    %cst_96 = arith.constant dense<0.000000e+00> : vector<16xf32>
    %145 = vector.multi_reduction <add>, %144, %cst_96 [1] : vector<16x8xf32> to vector<16xf32>
    %146 = vector.shape_cast %145 : vector<16xf32> to vector<16x1xf32>
    %cst_97 = arith.constant 8.000000e+00 : f32
    %147 = vector.broadcast %cst_97 : f32 to vector<16x1xf32>
    %148 = arith.divf %146, %147 : vector<16x1xf32>
    %cst_98 = arith.constant 9.99999974E-6 : f32
    %149 = vector.broadcast %cst_98 : f32 to vector<16x1xf32>
    %150 = arith.addf %148, %149 : vector<16x1xf32>
    %151 = math.rsqrt %150 : vector<16x1xf32>
    %152 = vector.broadcast %151 : vector<16x1xf32> to vector<16x8xf32>
    %153 = arith.mulf %143, %152 : vector<16x8xf32>
    %154 = vector.broadcast %14 : vector<1x8xf32> to vector<16x8xf32>
    %155 = arith.mulf %153, %154 : vector<16x8xf32>
    %156 = vector.broadcast %15 : vector<1x8xf32> to vector<16x8xf32>
    %157 = arith.addf %155, %156 : vector<16x8xf32>
    %158 = tpu.transpose %35, [1, 0] : vector<16x8xf32> -> vector<8x16xf32>
    %159 = arith.truncf %158 : vector<8x16xf32> to vector<8x16xbf16>
    %cst_99 = arith.constant dense<0.000000e+00> : vector<8x16xf32>
    %160 = tpu.matmul %159, %16, %cst_99 {dimension_numbers = #tpu.dot_dimension_numbers<[1], [0], [0], [1], [0, 0, 1, 1], [], []>} : vector<8x16xbf16>, vector<16x16xbf16>, vector<8x16xf32> -> vector<8x16xf32>
    %161 = vector.broadcast %17 : vector<1x16xf32> to vector<8x16xf32>
    %162 = arith.addf %160, %161 : vector<8x16xf32>
    %cst_100 = arith.constant dense<0.000000e+00> : vector<8x16xf32>
    %163 = tpu.matmul %159, %18, %cst_100 {dimension_numbers = #tpu.dot_dimension_numbers<[1], [0], [0], [1], [0, 0, 1, 1], [], []>} : vector<8x16xbf16>, vector<16x16xbf16>, vector<8x16xf32> -> vector<8x16xf32>
    %164 = vector.broadcast %19 : vector<1x16xf32> to vector<8x16xf32>
    %165 = arith.addf %163, %164 : vector<8x16xf32>
    %cst_101 = arith.constant dense<0.000000e+00> : vector<8x16xf32>
    %166 = tpu.matmul %159, %20, %cst_101 {dimension_numbers = #tpu.dot_dimension_numbers<[1], [0], [0], [1], [0, 0, 1, 1], [], []>} : vector<8x16xbf16>, vector<16x16xbf16>, vector<8x16xf32> -> vector<8x16xf32>
    %167 = vector.broadcast %21 : vector<1x16xf32> to vector<8x16xf32>
    %168 = arith.addf %166, %167 : vector<8x16xf32>
    %cst_102 = arith.constant 0.353553385 : f32
    %169 = vector.broadcast %cst_102 : f32 to vector<8x16xf32>
    %170 = arith.mulf %162, %169 : vector<8x16xf32>
    %171 = vector.extract_strided_slice %170 {offsets = [0, 0], sizes = [8, 8], strides = [1, 1]} : vector<8x16xf32> to vector<8x8xf32>
    %172 = arith.truncf %171 : vector<8x8xf32> to vector<8x8xbf16>
    %173 = vector.extract_strided_slice %165 {offsets = [0, 0], sizes = [8, 8], strides = [1, 1]} : vector<8x16xf32> to vector<8x8xf32>
    %174 = arith.truncf %173 : vector<8x8xf32> to vector<8x8xbf16>
    %175 = vector.extract_strided_slice %168 {offsets = [0, 0], sizes = [8, 8], strides = [1, 1]} : vector<8x16xf32> to vector<8x8xf32>
    %176 = arith.truncf %175 : vector<8x8xf32> to vector<8x8xbf16>
    %cst_103 = arith.constant dense<0.000000e+00> : vector<8x8xf32>
    %177 = tpu.matmul %172, %174, %cst_103 {dimension_numbers = #tpu.dot_dimension_numbers<[1], [1], [0], [0], [0, 0, 1, 0], [], []>} : vector<8x8xbf16>, vector<8x8xbf16>, vector<8x8xf32> -> vector<8x8xf32>
    %cst_104 = arith.constant dense<0xFF800000> : vector<8xf32>
    %178 = vector.multi_reduction <maximumf>, %177, %cst_104 [1] : vector<8x8xf32> to vector<8xf32>
    %179 = vector.shape_cast %178 : vector<8xf32> to vector<8x1xf32>
    %180 = vector.broadcast %179 : vector<8x1xf32> to vector<8x8xf32>
    %181 = arith.subf %177, %180 : vector<8x8xf32>
    %182 = math.exp %181 : vector<8x8xf32>
    %cst_105 = arith.constant dense<0.000000e+00> : vector<8xf32>
    %183 = vector.multi_reduction <add>, %182, %cst_105 [1] : vector<8x8xf32> to vector<8xf32>
    %184 = vector.shape_cast %183 : vector<8xf32> to vector<8x1xf32>
    %185 = tpu.reciprocal %184 {approx = true} : vector<8x1xf32> -> vector<8x1xf32>
    %186 = vector.broadcast %185 : vector<8x1xf32> to vector<8x8xf32>
    %187 = arith.mulf %182, %186 : vector<8x8xf32>
    %188 = arith.truncf %187 : vector<8x8xf32> to vector<8x8xbf16>
    %cst_106 = arith.constant dense<0.000000e+00> : vector<8x8xf32>
    %189 = tpu.matmul %188, %176, %cst_106 {dimension_numbers = #tpu.dot_dimension_numbers<[1], [0], [0], [1], [0, 0, 1, 1], [], []>} : vector<8x8xbf16>, vector<8x8xbf16>, vector<8x8xf32> -> vector<8x8xf32>
    %190 = arith.truncf %189 : vector<8x8xf32> to vector<8x8xbf16>
    %191 = vector.extract_strided_slice %22 {offsets = [0, 0], sizes = [8, 16], strides = [1, 1]} : vector<16x16xbf16> to vector<8x16xbf16>
    %cst_107 = arith.constant dense<0.000000e+00> : vector<8x16xf32>
    %192 = tpu.matmul %190, %191, %cst_107 {dimension_numbers = #tpu.dot_dimension_numbers<[1], [0], [0], [1], [0, 0, 1, 1], [], []>} : vector<8x8xbf16>, vector<8x16xbf16>, vector<8x16xf32> -> vector<8x16xf32>
    %193 = vector.extract_strided_slice %170 {offsets = [0, 8], sizes = [8, 8], strides = [1, 1]} : vector<8x16xf32> to vector<8x8xf32>
    %194 = arith.truncf %193 : vector<8x8xf32> to vector<8x8xbf16>
    %195 = vector.extract_strided_slice %165 {offsets = [0, 8], sizes = [8, 8], strides = [1, 1]} : vector<8x16xf32> to vector<8x8xf32>
    %196 = arith.truncf %195 : vector<8x8xf32> to vector<8x8xbf16>
    %197 = vector.extract_strided_slice %168 {offsets = [0, 8], sizes = [8, 8], strides = [1, 1]} : vector<8x16xf32> to vector<8x8xf32>
    %198 = arith.truncf %197 : vector<8x8xf32> to vector<8x8xbf16>
    %cst_108 = arith.constant dense<0.000000e+00> : vector<8x8xf32>
    %199 = tpu.matmul %194, %196, %cst_108 {dimension_numbers = #tpu.dot_dimension_numbers<[1], [1], [0], [0], [0, 0, 1, 0], [], []>} : vector<8x8xbf16>, vector<8x8xbf16>, vector<8x8xf32> -> vector<8x8xf32>
    %cst_109 = arith.constant dense<0xFF800000> : vector<8xf32>
    %200 = vector.multi_reduction <maximumf>, %199, %cst_109 [1] : vector<8x8xf32> to vector<8xf32>
    %201 = vector.shape_cast %200 : vector<8xf32> to vector<8x1xf32>
    %202 = vector.broadcast %201 : vector<8x1xf32> to vector<8x8xf32>
    %203 = arith.subf %199, %202 : vector<8x8xf32>
    %204 = math.exp %203 : vector<8x8xf32>
    %cst_110 = arith.constant dense<0.000000e+00> : vector<8xf32>
    %205 = vector.multi_reduction <add>, %204, %cst_110 [1] : vector<8x8xf32> to vector<8xf32>
    %206 = vector.shape_cast %205 : vector<8xf32> to vector<8x1xf32>
    %207 = tpu.reciprocal %206 {approx = true} : vector<8x1xf32> -> vector<8x1xf32>
    %208 = vector.broadcast %207 : vector<8x1xf32> to vector<8x8xf32>
    %209 = arith.mulf %204, %208 : vector<8x8xf32>
    %210 = arith.truncf %209 : vector<8x8xf32> to vector<8x8xbf16>
    %cst_111 = arith.constant dense<0.000000e+00> : vector<8x8xf32>
    %211 = tpu.matmul %210, %198, %cst_111 {dimension_numbers = #tpu.dot_dimension_numbers<[1], [0], [0], [1], [0, 0, 1, 1], [], []>} : vector<8x8xbf16>, vector<8x8xbf16>, vector<8x8xf32> -> vector<8x8xf32>
    %212 = arith.truncf %211 : vector<8x8xf32> to vector<8x8xbf16>
    %213 = vector.extract_strided_slice %22 {offsets = [8, 0], sizes = [8, 16], strides = [1, 1]} : vector<16x16xbf16> to vector<8x16xbf16>
    %cst_112 = arith.constant dense<0.000000e+00> : vector<8x16xf32>
    %214 = tpu.matmul %212, %213, %cst_112 {dimension_numbers = #tpu.dot_dimension_numbers<[1], [0], [0], [1], [0, 0, 1, 1], [], []>} : vector<8x8xbf16>, vector<8x16xbf16>, vector<8x16xf32> -> vector<8x16xf32>
    %215 = arith.addf %192, %214 : vector<8x16xf32>
    %216 = vector.broadcast %23 : vector<1x16xf32> to vector<8x16xf32>
    %217 = arith.addf %215, %216 : vector<8x16xf32>
    %218 = arith.addf %158, %217 : vector<8x16xf32>
    %cst_113 = arith.constant dense<0.000000e+00> : vector<8xf32>
    %219 = vector.multi_reduction <add>, %218, %cst_113 [1] : vector<8x16xf32> to vector<8xf32>
    %220 = vector.shape_cast %219 : vector<8xf32> to vector<8x1xf32>
    %cst_114 = arith.constant 1.600000e+01 : f32
    %221 = vector.broadcast %cst_114 : f32 to vector<8x1xf32>
    %222 = arith.divf %220, %221 : vector<8x1xf32>
    %223 = vector.broadcast %222 : vector<8x1xf32> to vector<8x16xf32>
    %224 = arith.subf %218, %223 : vector<8x16xf32>
    %225 = arith.mulf %224, %224 : vector<8x16xf32>
    %cst_115 = arith.constant dense<0.000000e+00> : vector<8xf32>
    %226 = vector.multi_reduction <add>, %225, %cst_115 [1] : vector<8x16xf32> to vector<8xf32>
    %227 = vector.shape_cast %226 : vector<8xf32> to vector<8x1xf32>
    %cst_116 = arith.constant 1.600000e+01 : f32
    %228 = vector.broadcast %cst_116 : f32 to vector<8x1xf32>
    %229 = arith.divf %227, %228 : vector<8x1xf32>
    %cst_117 = arith.constant 9.99999974E-6 : f32
    %230 = vector.broadcast %cst_117 : f32 to vector<8x1xf32>
    %231 = arith.addf %229, %230 : vector<8x1xf32>
    %232 = math.rsqrt %231 : vector<8x1xf32>
    %233 = vector.broadcast %232 : vector<8x1xf32> to vector<8x16xf32>
    %234 = arith.mulf %224, %233 : vector<8x16xf32>
    %235 = vector.broadcast %24 : vector<1x16xf32> to vector<8x16xf32>
    %236 = arith.mulf %234, %235 : vector<8x16xf32>
    %237 = vector.broadcast %25 : vector<1x16xf32> to vector<8x16xf32>
    %238 = arith.addf %236, %237 : vector<8x16xf32>
    %239 = arith.truncf %238 : vector<8x16xf32> to vector<8x16xbf16>
    %cst_118 = arith.constant dense<0.000000e+00> : vector<8x32xf32>
    %240 = tpu.matmul %239, %26, %cst_118 {dimension_numbers = #tpu.dot_dimension_numbers<[1], [0], [0], [1], [0, 0, 1, 1], [], []>} : vector<8x16xbf16>, vector<16x32xbf16>, vector<8x32xf32> -> vector<8x32xf32>
    %241 = vector.broadcast %27 : vector<1x32xf32> to vector<8x32xf32>
    %242 = arith.addf %240, %241 : vector<8x32xf32>
    %243 = arith.mulf %242, %242 : vector<8x32xf32>
    %244 = arith.mulf %242, %243 : vector<8x32xf32>
    %cst_119 = arith.constant 4.471500e-02 : f32
    %245 = vector.broadcast %cst_119 : f32 to vector<8x32xf32>
    %246 = arith.mulf %245, %244 : vector<8x32xf32>
    %247 = arith.addf %242, %246 : vector<8x32xf32>
    %cst_120 = arith.constant 0.797884583 : f32
    %248 = vector.broadcast %cst_120 : f32 to vector<8x32xf32>
    %249 = arith.mulf %248, %247 : vector<8x32xf32>
    %250 = math.tanh %249 : vector<8x32xf32>
    %cst_121 = arith.constant 1.000000e+00 : f32
    %251 = vector.broadcast %cst_121 : f32 to vector<8x32xf32>
    %252 = arith.addf %251, %250 : vector<8x32xf32>
    %cst_122 = arith.constant 5.000000e-01 : f32
    %253 = vector.broadcast %cst_122 : f32 to vector<8x32xf32>
    %254 = arith.mulf %253, %252 : vector<8x32xf32>
    %255 = arith.mulf %242, %254 : vector<8x32xf32>
    %256 = arith.truncf %255 : vector<8x32xf32> to vector<8x32xbf16>
    %cst_123 = arith.constant dense<0.000000e+00> : vector<8x16xf32>
    %257 = tpu.matmul %256, %28, %cst_123 {dimension_numbers = #tpu.dot_dimension_numbers<[1], [0], [0], [1], [0, 0, 1, 1], [], []>} : vector<8x32xbf16>, vector<32x16xbf16>, vector<8x16xf32> -> vector<8x16xf32>
    %258 = vector.broadcast %29 : vector<1x16xf32> to vector<8x16xf32>
    %259 = arith.addf %257, %258 : vector<8x16xf32>
    %260 = arith.addf %238, %259 : vector<8x16xf32>
    %cst_124 = arith.constant dense<0.000000e+00> : vector<8xf32>
    %261 = vector.multi_reduction <add>, %260, %cst_124 [1] : vector<8x16xf32> to vector<8xf32>
    %262 = vector.shape_cast %261 : vector<8xf32> to vector<8x1xf32>
    %cst_125 = arith.constant 1.600000e+01 : f32
    %263 = vector.broadcast %cst_125 : f32 to vector<8x1xf32>
    %264 = arith.divf %262, %263 : vector<8x1xf32>
    %265 = vector.broadcast %264 : vector<8x1xf32> to vector<8x16xf32>
    %266 = arith.subf %260, %265 : vector<8x16xf32>
    %267 = arith.mulf %266, %266 : vector<8x16xf32>
    %cst_126 = arith.constant dense<0.000000e+00> : vector<8xf32>
    %268 = vector.multi_reduction <add>, %267, %cst_126 [1] : vector<8x16xf32> to vector<8xf32>
    %269 = vector.shape_cast %268 : vector<8xf32> to vector<8x1xf32>
    %cst_127 = arith.constant 1.600000e+01 : f32
    %270 = vector.broadcast %cst_127 : f32 to vector<8x1xf32>
    %271 = arith.divf %269, %270 : vector<8x1xf32>
    %cst_128 = arith.constant 9.99999974E-6 : f32
    %272 = vector.broadcast %cst_128 : f32 to vector<8x1xf32>
    %273 = arith.addf %271, %272 : vector<8x1xf32>
    %274 = math.rsqrt %273 : vector<8x1xf32>
    %275 = vector.broadcast %274 : vector<8x1xf32> to vector<8x16xf32>
    %276 = arith.mulf %266, %275 : vector<8x16xf32>
    %277 = vector.broadcast %30 : vector<1x16xf32> to vector<8x16xf32>
    %278 = arith.mulf %276, %277 : vector<8x16xf32>
    %279 = vector.broadcast %31 : vector<1x16xf32> to vector<8x16xf32>
    %280 = arith.addf %278, %279 : vector<8x16xf32>
    %281 = tpu.transpose %280, [1, 0] : vector<8x16xf32> -> vector<16x8xf32>
    %282 = arith.addf %157, %281 : vector<16x8xf32>
    %cst_129 = arith.constant dense<0.000000e+00> : vector<16xf32>
    %283 = vector.multi_reduction <add>, %282, %cst_129 [1] : vector<16x8xf32> to vector<16xf32>
    %284 = vector.shape_cast %283 : vector<16xf32> to vector<16x1xf32>
    %cst_130 = arith.constant 8.000000e+00 : f32
    %285 = vector.broadcast %cst_130 : f32 to vector<16x1xf32>
    %286 = arith.divf %284, %285 : vector<16x1xf32>
    %287 = vector.broadcast %286 : vector<16x1xf32> to vector<16x8xf32>
    %288 = arith.subf %282, %287 : vector<16x8xf32>
    %289 = arith.mulf %288, %288 : vector<16x8xf32>
    %cst_131 = arith.constant dense<0.000000e+00> : vector<16xf32>
    %290 = vector.multi_reduction <add>, %289, %cst_131 [1] : vector<16x8xf32> to vector<16xf32>
    %291 = vector.shape_cast %290 : vector<16xf32> to vector<16x1xf32>
    %cst_132 = arith.constant 8.000000e+00 : f32
    %292 = vector.broadcast %cst_132 : f32 to vector<16x1xf32>
    %293 = arith.divf %291, %292 : vector<16x1xf32>
    %cst_133 = arith.constant 9.99999974E-6 : f32
    %294 = vector.broadcast %cst_133 : f32 to vector<16x1xf32>
    %295 = arith.addf %293, %294 : vector<16x1xf32>
    %296 = math.rsqrt %295 : vector<16x1xf32>
    %297 = vector.broadcast %296 : vector<16x1xf32> to vector<16x8xf32>
    %298 = arith.mulf %288, %297 : vector<16x8xf32>
    %299 = vector.broadcast %32 : vector<1x8xf32> to vector<16x8xf32>
    %300 = arith.mulf %298, %299 : vector<16x8xf32>
    %301 = vector.broadcast %33 : vector<1x8xf32> to vector<16x8xf32>
    %302 = arith.addf %300, %301 : vector<16x8xf32>
    %c0_134 = arith.constant 0 : index
    %c0_135 = arith.constant 0 : index
    %c0_136 = arith.constant 0 : index
    %303 = vector.load %arg36[%c0_134, %c0_135, %c0_136] : memref<1x16x8xf32, #tpu.memory_space<vmem>>, vector<1x16x8xf32>
    %304 = vector.shape_cast %303 : vector<1x16x8xf32> to vector<16x8xf32>
    %305 = vector.shape_cast %302 : vector<16x8xf32> to vector<1x16x8xf32>
    tpu.vector_store %arg36[%c0_134, %c0_135, %c0_136], %305 {strides = array<i32>} : memref<1x16x8xf32, #tpu.memory_space<vmem>>, vector<1x16x8xf32>,
    return
  }
  func.func @transform_0(%arg0: i32) -> (i32, i32, i32) {
    %c0_i32 = arith.constant 0 : i32
    %c0_i32_0 = arith.constant 0 : i32
    %c0_i32_1 = arith.constant 0 : i32
    return %arg0, %c0_i32, %c0_i32_0 : i32, i32, i32
  }
  func.func @transform_1(%arg0: i32) -> (i32, i32) {
    %c0_i32 = arith.constant 0 : i32
    %c0_i32_0 = arith.constant 0 : i32
    %c0_i32_1 = arith.constant 0 : i32
    return %c0_i32, %c0_i32_0 : i32, i32
  }
  func.func @transform_2(%arg0: i32) -> (i32, i32) {
    %c0_i32 = arith.constant 0 : i32
    %c0_i32_0 = arith.constant 0 : i32
    %c0_i32_1 = arith.constant 0 : i32
    return %c0_i32, %c0_i32_0 : i32, i32
  }
  func.func @transform_3(%arg0: i32) -> (i32, i32) {
    %c0_i32 = arith.constant 0 : i32
    %c0_i32_0 = arith.constant 0 : i32
    %c0_i32_1 = arith.constant 0 : i32
    return %c0_i32, %c0_i32_0 : i32, i32
  }
  func.func @transform_4(%arg0: i32) -> (i32, i32) {
    %c0_i32 = arith.constant 0 : i32
    %c0_i32_0 = arith.constant 0 : i32
    %c0_i32_1 = arith.constant 0 : i32
    return %c0_i32, %c0_i32_0 : i32, i32
  }
  func.func @transform_5(%arg0: i32) -> (i32, i32) {
    %c0_i32 = arith.constant 0 : i32
    %c0_i32_0 = arith.constant 0 : i32
    %c0_i32_1 = arith.constant 0 : i32
    return %c0_i32, %c0_i32_0 : i32, i32
  }
  func.func @transform_6(%arg0: i32) -> (i32, i32) {
    %c0_i32 = arith.constant 0 : i32
    %c0_i32_0 = arith.constant 0 : i32
    %c0_i32_1 = arith.constant 0 : i32
    return %c0_i32, %c0_i32_0 : i32, i32
  }
  func.func @transform_7(%arg0: i32) -> (i32, i32) {
    %c0_i32 = arith.constant 0 : i32
    %c0_i32_0 = arith.constant 0 : i32
    %c0_i32_1 = arith.constant 0 : i32
    return %c0_i32, %c0_i32_0 : i32, i32
  }
  func.func @transform_8(%arg0: i32) -> (i32, i32) {
    %c0_i32 = arith.constant 0 : i32
    %c0_i32_0 = arith.constant 0 : i32
    %c0_i32_1 = arith.constant 0 : i32
    return %c0_i32, %c0_i32_0 : i32, i32
  }
  func.func @transform_9(%arg0: i32) -> (i32, i32) {
    %c0_i32 = arith.constant 0 : i32
    %c0_i32_0 = arith.constant 0 : i32
    %c0_i32_1 = arith.constant 0 : i32
    return %c0_i32, %c0_i32_0 : i32, i32
  }
  func.func @transform_10(%arg0: i32) -> (i32, i32) {
    %c0_i32 = arith.constant 0 : i32
    %c0_i32_0 = arith.constant 0 : i32
    %c0_i32_1 = arith.constant 0 : i32
    return %c0_i32, %c0_i32_0 : i32, i32
  }
  func.func @transform_11(%arg0: i32) -> (i32, i32) {
    %c0_i32 = arith.constant 0 : i32
    %c0_i32_0 = arith.constant 0 : i32
    %c0_i32_1 = arith.constant 0 : i32
    return %c0_i32, %c0_i32_0 : i32, i32
  }
  func.func @transform_12(%arg0: i32) -> (i32, i32) {
    %c0_i32 = arith.constant 0 : i32
    %c0_i32_0 = arith.constant 0 : i32
    %c0_i32_1 = arith.constant 0 : i32
    return %c0_i32, %c0_i32_0 : i32, i32
  }
  func.func @transform_13(%arg0: i32) -> (i32, i32) {
    %c0_i32 = arith.constant 0 : i32
    %c0_i32_0 = arith.constant 0 : i32
    %c0_i32_1 = arith.constant 0 : i32
    return %c0_i32, %c0_i32_0 : i32, i32
  }
  func.func @transform_14(%arg0: i32) -> (i32, i32) {
    %c0_i32 = arith.constant 0 : i32
    %c0_i32_0 = arith.constant 0 : i32
    %c0_i32_1 = arith.constant 0 : i32
    return %c0_i32, %c0_i32_0 : i32, i32
  }
  func.func @transform_15(%arg0: i32) -> (i32, i32) {
    %c0_i32 = arith.constant 0 : i32
    %c0_i32_0 = arith.constant 0 : i32
    %c0_i32_1 = arith.constant 0 : i32
    return %c0_i32, %c0_i32_0 : i32, i32
  }
  func.func @transform_16(%arg0: i32) -> (i32, i32) {
    %c0_i32 = arith.constant 0 : i32
    %c0_i32_0 = arith.constant 0 : i32
    %c0_i32_1 = arith.constant 0 : i32
    return %c0_i32, %c0_i32_0 : i32, i32
  }
  func.func @transform_17(%arg0: i32) -> (i32, i32) {
    %c0_i32 = arith.constant 0 : i32
    %c0_i32_0 = arith.constant 0 : i32
    %c0_i32_1 = arith.constant 0 : i32
    return %c0_i32, %c0_i32_0 : i32, i32
  }
  func.func @transform_18(%arg0: i32) -> (i32, i32) {
    %c0_i32 = arith.constant 0 : i32
    %c0_i32_0 = arith.constant 0 : i32
    %c0_i32_1 = arith.constant 0 : i32
    return %c0_i32, %c0_i32_0 : i32, i32
  }
  func.func @transform_19(%arg0: i32) -> (i32, i32) {
    %c0_i32 = arith.constant 0 : i32
    %c0_i32_0 = arith.constant 0 : i32
    %c0_i32_1 = arith.constant 0 : i32
    return %c0_i32, %c0_i32_0 : i32, i32
  }
  func.func @transform_20(%arg0: i32) -> (i32, i32) {
    %c0_i32 = arith.constant 0 : i32
    %c0_i32_0 = arith.constant 0 : i32
    %c0_i32_1 = arith.constant 0 : i32
    return %c0_i32, %c0_i32_0 : i32, i32
  }
  func.func @transform_21(%arg0: i32) -> (i32, i32) {
    %c0_i32 = arith.constant 0 : i32
    %c0_i32_0 = arith.constant 0 : i32
    %c0_i32_1 = arith.constant 0 : i32
    return %c0_i32, %c0_i32_0 : i32, i32
  }
  func.func @transform_22(%arg0: i32) -> (i32, i32) {
    %c0_i32 = arith.constant 0 : i32
    %c0_i32_0 = arith.constant 0 : i32
    %c0_i32_1 = arith.constant 0 : i32
    return %c0_i32, %c0_i32_0 : i32, i32
  }
  func.func @transform_23(%arg0: i32) -> (i32, i32) {
    %c0_i32 = arith.constant 0 : i32
    %c0_i32_0 = arith.constant 0 : i32
    %c0_i32_1 = arith.constant 0 : i32
    return %c0_i32, %c0_i32_0 : i32, i32
  }
  func.func @transform_24(%arg0: i32) -> (i32, i32) {
    %c0_i32 = arith.constant 0 : i32
    %c0_i32_0 = arith.constant 0 : i32
    %c0_i32_1 = arith.constant 0 : i32
    return %c0_i32, %c0_i32_0 : i32, i32
  }
  func.func @transform_25(%arg0: i32) -> (i32, i32) {
    %c0_i32 = arith.constant 0 : i32
    %c0_i32_0 = arith.constant 0 : i32
    %c0_i32_1 = arith.constant 0 : i32
    return %c0_i32, %c0_i32_0 : i32, i32
  }
  func.func @transform_26(%arg0: i32) -> (i32, i32) {
    %c0_i32 = arith.constant 0 : i32
    %c0_i32_0 = arith.constant 0 : i32
    %c0_i32_1 = arith.constant 0 : i32
    return %c0_i32, %c0_i32_0 : i32, i32
  }
  func.func @transform_27(%arg0: i32) -> (i32, i32) {
    %c0_i32 = arith.constant 0 : i32
    %c0_i32_0 = arith.constant 0 : i32
    %c0_i32_1 = arith.constant 0 : i32
    return %c0_i32, %c0_i32_0 : i32, i32
  }
  func.func @transform_28(%arg0: i32) -> (i32, i32) {
    %c0_i32 = arith.constant 0 : i32
    %c0_i32_0 = arith.constant 0 : i32
    %c0_i32_1 = arith.constant 0 : i32
    return %c0_i32, %c0_i32_0 : i32, i32
  }
  func.func @transform_29(%arg0: i32) -> (i32, i32) {
    %c0_i32 = arith.constant 0 : i32
    %c0_i32_0 = arith.constant 0 : i32
    %c0_i32_1 = arith.constant 0 : i32
    return %c0_i32, %c0_i32_0 : i32, i32
  }
  func.func @transform_30(%arg0: i32) -> (i32, i32) {
    %c0_i32 = arith.constant 0 : i32
    %c0_i32_0 = arith.constant 0 : i32
    %c0_i32_1 = arith.constant 0 : i32
    return %c0_i32, %c0_i32_0 : i32, i32
  }
  func.func @transform_31(%arg0: i32) -> (i32, i32) {
    %c0_i32 = arith.constant 0 : i32
    %c0_i32_0 = arith.constant 0 : i32
    %c0_i32_1 = arith.constant 0 : i32
    return %c0_i32, %c0_i32_0 : i32, i32
  }
  func.func @transform_32(%arg0: i32) -> (i32, i32) {
    %c0_i32 = arith.constant 0 : i32
    %c0_i32_0 = arith.constant 0 : i32
    %c0_i32_1 = arith.constant 0 : i32
    return %c0_i32, %c0_i32_0 : i32, i32
  }
  func.func @transform_33(%arg0: i32) -> (i32, i32) {
    %c0_i32 = arith.constant 0 : i32
    %c0_i32_0 = arith.constant 0 : i32
    %c0_i32_1 = arith.constant 0 : i32
    return %c0_i32, %c0_i32_0 : i32, i32
  }
  func.func @transform_34(%arg0: i32) -> (i32, i32) {
    %c0_i32 = arith.constant 0 : i32
    %c0_i32_0 = arith.constant 0 : i32
    %c0_i32_1 = arith.constant 0 : i32
    return %c0_i32, %c0_i32_0 : i32, i32
  }
  func.func @transform_35(%arg0: i32) -> (i32, i32, i32) {
    %c0_i32 = arith.constant 0 : i32
    %c0_i32_0 = arith.constant 0 : i32
    %c0_i32_1 = arith.constant 0 : i32
    return %arg0, %c0_i32, %c0_i32_0 : i32, i32, i32
  }
}

</mosaic_0001>

<bundles_post_ra>
// kernel: spatio_temporal_forward.1
= control target key start
LH: loop header
LB: loop body
LE: loop exit
PB: predicated region body
PF: predicated region fallthrough
CT: control target
= control target key end

     0   :  { %s3215_s6 = smov 1   ;;  %s3216_s10 = smov 2   ;;  %s3723_s0 = inlined_call_operand.smem [shape: u32[36], index: -1, kind: input, shape index: {}] }
   0x1   :  { %s3264_s5 = sld [smem:[%s3723_s0]]   ;;  %s3217_s14 = smov 3  }
   0x2   :  { %s3269_s9 = sld [smem:[%s3723_s0 + %s3215_s6]]   ;;  %s3218_s18 = smov 4  }
   0x3   :  { %s3274_s13 = sld [smem:[%s3723_s0 + %s3216_s10]]   ;;  %s3219_s22 = smov 5  }
   0x4   :  { %s3279_s17 = sld [smem:[%s3723_s0 + %s3217_s14]]   ;;  %s3220_s26 = smov 6  }
   0x5   :  { %s3284_s21 = sld [smem:[%s3723_s0 + %s3218_s18]]   ;;  %s3221_s30 = smov 7  }
   0x6   :  { %s3289_s25 = sld [smem:[%s3723_s0 + %s3219_s22]]   ;;  %s3222_s4 = smov 8  }
   0x7   :  { %s3294_s29 = sld [smem:[%s3723_s0 + %s3220_s26]]   ;;  %s3223_s10 = smov 9  }
   0x8   :  { %s3299_s3 = sld [smem:[%s3723_s0 + %s3221_s30]]   ;;  %s3224_s15 = smov 10  }
   0x9   :  { %s3304_s8 = sld [smem:[%s3723_s0 + %s3222_s4]]   ;;  %s3225_s20 = smov 11  }
   0xa   :  { %s3309_s14 = sld [smem:[%s3723_s0 + %s3223_s10]]   ;;  %s3226_s26 = smov 12  }
   0xb   :  { %s3314_s19 = sld [smem:[%s3723_s0 + %s3224_s15]]   ;;  %s3227_s1 = smov 13  }
   0xc   :  { %s3319_s24 = sld [smem:[%s3723_s0 + %s3225_s20]]   ;;  %s3228_s7 = smov 14  }
   0xd   :  { %s3324_s30 = sld [smem:[%s3723_s0 + %s3226_s26]]   ;;  %s3229_s15 = smov 15  }
   0xe   :  { %s3329_s6 = sld [smem:[%s3723_s0 + %s3227_s1]]   ;;  %s3230_s22 = smov 16  }
   0xf   :  { %s3334_s12 = sld [smem:[%s3723_s0 + %s3228_s7]]   ;;  %s3231_s28 = smov 17  }
  0x10   :  { %s3339_s20 = sld [smem:[%s3723_s0 + %s3229_s15]]   ;;  %s3232_s7 = smov 18  }
  0x11   :  { %s3344_s27 = sld [smem:[%s3723_s0 + %s3230_s22]]   ;;  %s3233_s15 = smov 19  }
  0x12   :  { %s3349_s4 = sld [smem:[%s3723_s0 + %s3231_s28]]   ;;  %s3234_s22 = smov 20  }
  0x13   :  { %3728 = sst [smem:[#allocation8_spill]] %s3324_s30  ;;  %s3235_s28 = smov 21  }
  0x14   :  { %s3369_s30 = sld [smem:[%s3723_s0 + %s3235_s28]]   ;;  %s3239_s28 = smov 25  }
  0x15   :  { %3729 = sst [smem:[#allocation9_spill]] %s3334_s12 }
  0x16   :  { %3730 = sst [smem:[#allocation10_spill]] %s3339_s20 }
  0x17   :  { %3731 = sst [smem:[#allocation11_spill]] %s3344_s27 }
  0x18   :  { %s3354_s12 = sld [smem:[%s3723_s0 + %s3232_s7]]   ;;  %s3236_s7 = smov 22  }
  0x19   :  { %s3359_s20 = sld [smem:[%s3723_s0 + %s3233_s15]]   ;;  %s3237_s15 = smov 23  }
  0x1a   :  { %s3364_s27 = sld [smem:[%s3723_s0 + %s3234_s22]]   ;;  %s3238_s22 = smov 24  }
  0x1b   :  { %3735 = sst [smem:[#allocation15_spill]] %s3369_s30 }
  0x1c   :  { %s3389_s30 = sld [smem:[%s3723_s0 + %s3239_s28]]   ;;  %s3243_s28 = smov 29  }
  0x1e   :  { %3732 = sst [smem:[#allocation12_spill]] %s3354_s12 }
  0x1f   :  { %3733 = sst [smem:[#allocation13_spill]] %s3359_s20 }
  0x20   :  { %3734 = sst [smem:[#allocation14_spill]] %s3364_s27 }
  0x21   :  { %s3374_s12 = sld [smem:[%s3723_s0 + %s3236_s7]]   ;;  %s3240_s7 = smov 26  }
  0x22   :  { %s3379_s20 = sld [smem:[%s3723_s0 + %s3237_s15]]   ;;  %s3241_s15 = smov 27  }
  0x23   :  { %s3384_s27 = sld [smem:[%s3723_s0 + %s3238_s22]]   ;;  %s3242_s22 = smov 28  }
  0x24   :  { %3739 = sst [smem:[#allocation19_spill]] %s3389_s30 }
  0x25   :  { %s3409_s30 = sld [smem:[%s3723_s0 + %s3243_s28]]   ;;  %s3247_s28 = smov 33  }
  0x27   :  { %3736 = sst [smem:[#allocation16_spill]] %s3374_s12 }
  0x28   :  { %3737 = sst [smem:[#allocation17_spill]] %s3379_s20 }
  0x29   :  { %3738 = sst [smem:[#allocation18_spill]] %s3384_s27 }
  0x2a   :  { %s3394_s12 = sld [smem:[%s3723_s0 + %s3240_s7]]   ;;  %s3244_s7 = smov 30  }
  0x2b   :  { %s3399_s20 = sld [smem:[%s3723_s0 + %s3241_s15]]   ;;  %s3245_s15 = smov 31  }
  0x2c   :  { %s3404_s27 = sld [smem:[%s3723_s0 + %s3242_s22]]   ;;  %s3246_s22 = smov 32  }
  0x2d   :  { %3743 = sst [smem:[#allocation23_spill]] %s3409_s30 }
  0x2e   :  { %s3429_s30 = sld [smem:[%s3723_s0 + %s3247_s28]]  }
  0x30   :  { %3740 = sst [smem:[#allocation20_spill]] %s3394_s12 }
  0x31   :  { %3741 = sst [smem:[#allocation21_spill]] %s3399_s20 }
  0x32   :  { %3742 = sst [smem:[#allocation22_spill]] %s3404_s27 }
  0x33   :  { %s3414_s12 = sld [smem:[%s3723_s0 + %s3244_s7]]   ;;  %s3248_s7 = smov 34  }
  0x34   :  { %s3419_s20 = sld [smem:[%s3723_s0 + %s3245_s15]]   ;;  %s3249_s15 = smov 35  }
  0x35   :  { %s3424_s27 = sld [smem:[%s3723_s0 + %s3246_s22]]  }
  0x39   :  { %3744 = sst [smem:[#allocation24_spill]] %s3414_s12 }
  0x3a   :  { %3745 = sst [smem:[#allocation25_spill]] %s3419_s20 }
  0x3b   :  { %s3434_s12 = sld [smem:[%s3723_s0 + %s3248_s7]]  }
  0x3c   :  { %s3439_s20 = sld [smem:[%s3723_s0 + %s3249_s15]]  }
  0x3d   :  { %76 = vsyncpa [#allocation3], 0 }
  0x3e   :  { %77 = vsyncpa [#allocation5], 0  ;;  %s3441_s22 = smov 0  }
  0x3f LB: > { %s3447_s23 = sadd.s32 4294967295, %s3213_s22   ;;  %p2770_p0 = scmp.ge.s32.totalorder %s3213_s22, 1  ;;  %s3213_s22 = sphi %s3441_s22, %s83_s22  }
  0x40   : > { %p854_p1 = scmp.lt.s32.totalorder %s3213_s22, 3  ;;  %p3726_p2 = scmp.eq.s32.totalorder %s3447_s23, 0 }
  0x41   : > { %s3250_s26 = smov [#allocation2]   ;;  %s3251_s1 = smov [#allocation4]  }
  0x42   : > { %p3452_p3 = pnand %p2770_p0, %p854_p1  ;;  %s963_s28 = sshll.u32 %s3250_s26, 4  ;;  %s964_s28 = int_to_ptr.vmem [resolvable:$true] %s963_s28 }
  0x43   : > { %s974_s2 = sshll.u32 %s3251_s1, 4  ;;  %s3143_s10 = scalar_lea.hbm %s3429_s30, 16  ;;  %s3464_s2 = int_to_ptr.vmem [resolvable:$true] %s974_s2 }
  0x44   : > { %s3746_s0 = scalar_select %p3452_p3, 1, 0 }
  0x45   : > { %p3028_p4 = pneg %p3452_p3  ;;  %p3144_p6 = scmp.ne.s32.totalorder %s3429_s30, %s3143_s10 }
  0x46   : > { %p3150_p10 = scmp.lt.u32.totalorder %s3143_s10, %s3429_s30 }
  0x47   : > { %p3460_p5 = pnand %p3726_p2, %p3028_p4 }
  0x49   : > { %p3145_p7 = pneg %p3460_p5 }
  0x4b   : > { %p3146_p8 = pnand %p3145_p7, %p3144_p6 }
  0x4d   : > { %p3147_p9 = pneg %p3146_p8 }
  0x4f   : > { %p3152_p11 = pnand %p3150_p10, %p3147_p9 }
  0x51   : > { %3155 = shalt.err (!%p3152_p11)
}
  0x52   : > { %s3156_s11 = scalar_lea.vmem %s964_s28, 16  ;;  %s3163_s15 = scalar_lea.vmem %s964_s28, 32 }
  0x53   : > { %p3157_p12 = scmp.ne.s32.totalorder %s964_s28, %s3156_s11  ;;  %p3164_p1 = scmp.lt.s32.totalorder %s964_s28, %s964_s28 }
  0x54   : > { %p3165_p4 = scmp.lt.s32.totalorder %s3163_s15, %s3156_s11 }
  0x55   : > { %p3159_p13 = pnand %p3157_p12, %p3145_p7 }
  0x56   : > { %p3166_p2 = por %p3165_p4, %p3164_p1 }
  0x57   : > { %p3160_p0 = pneg %p3159_p13 }
  0x59   : > { %p3167_p3 = pnand %p3166_p2, %p3160_p0 }
  0x5b   : > { %3170 = shalt.err (!%p3167_p3)
}
  0x5c   : > { %3031 = dma.hbm_to_vmem [thread:$0]  (!%p3460_p5), %s3429_s30, 16, %s964_s28, [#allocation3]  }
  0x5d   : > { %s3171_s16 = scalar_lea.hbm %s3434_s12, 16 }
  0x5e   : > { %p3172_p6 = scmp.ne.s32.totalorder %s3434_s12, %s3171_s16  ;;  %p3178_p10 = scmp.lt.u32.totalorder %s3171_s16, %s3434_s12 }
  0x60   : > { %p3174_p8 = pnand %p3172_p6, %p3145_p7 }
  0x62   : > { %p3175_p9 = pneg %p3174_p8 }
  0x64   : > { %p3180_p11 = pnand %p3178_p10, %p3175_p9 }
  0x66   : > { %3183 = shalt.err (!%p3180_p11)
}
  0x67   : > { %s3184_s18 = scalar_lea.vmem %s3464_s2, 16  ;;  %s3191_s26 = scalar_lea.vmem %s3464_s2, 32 }
  0x68   : > { %p3185_p2 = scmp.ne.s32.totalorder %s3464_s2, %s3184_s18  ;;  %p3192_p13 = scmp.lt.s32.totalorder %s3464_s2, %s3464_s2 }
  0x69   : > { %p3193_p0 = scmp.lt.s32.totalorder %s3191_s26, %s3184_s18 }
  0x6a   : > { %p3187_p3 = pnand %p3185_p2, %p3145_p7 }
  0x6b   : > { %p3194_p1 = por %p3193_p0, %p3192_p13 }
  0x6c   : > { %p3188_p12 = pneg %p3187_p3 }
  0x6e   : > { %p3195_p4 = pnand %p3194_p1, %p3188_p12 }
  0x70   : > { %3198 = shalt.err (!%p3195_p4)
}
  0x71   : > { %3034 = dma.hbm_to_vmem [thread:$0]  (!%p3460_p5), %s3434_s12, 16, %s3464_s2, [#allocation5]  }
  0x72   : > { %p3748_p6 = scmp.ne.s32.totalorder %s3746_s0, 0 }
  0x73   : > { %p3749_p8 = scmp.eq.s32.totalorder (!%p3748_p6), %s3447_s23, 0 }
  0x74   : > { %995 = sbr.rel (%p3748_p6) target bundleno = 4850 (0x12f2), region = 160 }
  0x7b   : > { %3204 = dma.done.wait (%p3749_p8), [#allocation3], 16   ;;  %p3750_p7 = pmov %p3749_p8 }
  0x7d   : > { %3206 = vsyncadd (%p3750_p7), [#allocation3], 4294967280  ;;  %p3751_p9 = pmov %p3750_p7 }
  0x7e   : > { %p3752_p10 = pmov %p3750_p7 }
  0x7f   : > { %3208 = dma.done.wait (%p3751_p9), [#allocation5], 16  }
  0x80   : > { %3210 = vsyncadd (%p3752_p10), [#allocation5], 4294967280  ;;  %p1087_p5 = scmp.lt.s32.totalorder %s3447_s23, 1  ;;  %v3252_v0 = vmov 0.0   ;;  %vm3253_vm0 = vmmov 0   ;;  %vm1156_vm1 = vcmask 1043456  }
  0x81   : > { %2890 = vmatprep.subr.bf16.mxu1 %v3252_v0  ;;  %2884 = vmatprep.subr.bf16.mxu0 %v3252_v0  ;;  %v1100_v1 = vld [vmem:[%s3279_s17] sm:$0xf]  ;;  %vm1152_vm2 = vcmask 64512   ;;  %vm1306_vm3 = vcmask 31744   ;;  %s3254_s1 = smov 124   ;;  %vm1354_vm4 = vcmask 130048  }
  0x82   : > { %2892 = vmatprep.mubr.msk.bf16.mxu1 %vm3253_vm0, %v3252_v0  ;;  %s3772_s23 = smov (!%p1087_p5, %s3447_s23), 1  ;;  %2886 = vmatprep.mubr.msk.bf16.mxu0 %vm3253_vm0, %v3252_v0  ;;  %v1098_v2 = vld [vmem:[%s3269_s9] sm:$0xf]  ;;  %v1208_v4 = vsel %vm1156_vm1, %v1100_v1, 0  ;;  %vm1555_vm5 = vcmask 1041408   ;;  %s3753_s2 = sld [smem:[#allocation15_spill]] }
  0x83   : > { %s2836_s0 = sshll.u32 %s3772_s23, 4  ;;  %v1158_v5 = vsel %vm1156_vm1, %v1098_v2, 0  ;;  %2891 = vmatpush3.bf16.msra.mxu1 %v1208_v4  ;;  %v2781_v8 = vld [vmem:[%s3274_s13] ss:$0 sm:$0xff]  ;;  %s3754_s7 = sld [smem:[#allocation8_spill]]  ;;  %vm1791_vm6 = vcmask 261120  }
  0x84   : > { %s1091_s28 = scalar_lea.vmem %s3264_s5, %s2836_s0  ;;  %2885 = vmatpush3.bf16.msra.mxu0 %v1158_v5  ;;  %2902 = vmatprep.subr.bf16.mxu1 %v3252_v0  ;;  %v2783_v9 = vld [vmem:[%s3284_s21] ss:$0 sm:$0xff]  ;;  %s3755_s10 = sld [smem:[#allocation13_spill]] }
  0x85   : > { %v3524_v3 = vld [vmem:[%s1091_s28] sm:$0xff]  ;;  %v3528_v6 = vld [vmem:[%s1091_s28 + $0x8] sm:$0xff]  ;;  %2896 = vmatprep.subr.bf16.mxu0 %v3252_v0  ;;  %s3756_s11 = sld [smem:[#allocation16_spill]]  ;;  %s3757_s15 = sld [smem:[#allocation12_spill]] }
  0x86   : > { %v1145_v7 = vpack.c.bf16 %v3528_v6, %v3524_v3  ;;  %v1102_v27 = vld [vmem:[%s3289_s25] sm:$0xf]  ;;  %s3758_s16 = sld [smem:[#allocation14_spill]]  ;;  %s3255_s18 = smov 120  }
  0x87   : > { %v1258_v28 = vsel %vm1156_vm1, %v1102_v27, 0  ;;  %v2785_v57 = vld [vmem:[%s3294_s29] ss:$0 sm:$0xff]  ;;  %s3759_s26 = sld [smem:[#allocation17_spill]]  ;;  %s3760_s28 = sld [smem:[#allocation18_spill]] }
  0x88   : > { %2893 = vmatmul.mubr.msk.bf16.vlgmr.msra.gmra.mrb[0].mxu1 %vm1152_vm2, %v1145_v7  ;;  %2887 = vmatmul.mubr.msk.bf16.vlgmr.msra.gmra.mrb[0].mxu0 %vm1152_vm2, %v1145_v7 }
  0x89   : > { %2904 = vmatprep.mubr.msk.bf16.mxu1 %vm3253_vm0, %v3252_v0  ;;  %2898 = vmatprep.mubr.msk.bf16.mxu0 %vm3253_vm0, %v3252_v0 }
  0x8a   : > { %2897 = vmatpush3.bf16.msra.mxu0 %v1258_v28 }
  0x8b   : > { %2908 = vmatprep.subr.bf16.mxu0 %v3252_v0 }
  0x90   : > { %2899 = vmatmul.mubr.msk.bf16.vlgmr.msra.gmra.mrb[4].mxu0 %vm1152_vm2, %v1145_v7 }
  0x91   : > { %2910 = vmatprep.mubr.msk.bf16.mxu0 %vm3253_vm0, %v3252_v0 }
 0x15b   : > { %v1244_v10 = vpop.f32.mrb[0].mxu1  ;;  %v1194_v11 = vpop.f32.mrb[0].mxu0 }
 0x15c   : > { %v2894_v12 = vpop.f32.mrb[1].mxu1  ;;  %v1195_v13 = vadd.f32 %v2781_v8, %v1194_v11  ;;  %v2888_v14 = vpop.f32.mrb[1].mxu0  ;;  %v1245_v17 = vadd.f32 %v2783_v9, %v1244_v10 }
 0x15d   : > { %v1247_v15 = vpop.f32.mrb[2].mxu1  ;;  %v1197_v16 = vpop.f32.mrb[2].mxu0 }
 0x15e   : > { %v1248_v18 = vadd.f32 %v2783_v9, %v1247_v15  ;;  %v1301_v19 = vmul.f32 0.5, %v1195_v13  ;;  %v2895_v20 = vpop.f32.mrb[3].mxu1  ;;  %v1198_v21 = vadd.f32 %v2781_v8, %v1197_v16  ;;  %v2889_v22 = vpop.f32.mrb[3].mxu0 }
 0x160   : > { %v1302_v23 = vmul.f32 0.5, %v1198_v21  ;;  %v1304_v24 = vpack.c.bf16 %v1248_v18, %v1245_v17  ;;  %v1104_v18 = vld [vmem:[%s3299_s3] sm:$0xf] }
 0x162   : > { %v1303_v25 = vpack.c.bf16 %v1302_v23, %v1301_v19  ;;  %1427 = vrot.lane.b32.xlu0 %v1304_v24, %s3254_s1  ;;  %v1311_v26 = vsel %vm1306_vm3, %v1304_v24, 0  ;;  %v2791_v19 = vcombine.low %v1104_v18, %v1104_v18 }
 0x163   : > { %2903 = vmatpush3.bf16.xpose.msra.mxu1 %v1311_v26  ;;  %v1294_v54 = vpop.f32.mrb[4].mxu0 }
 0x164   : > { %2914 = vmatprep.subr.bf16.mxu1 %v3252_v0  ;;  %v2900_v55 = vpop.f32.mrb[5].mxu0  ;;  %v1295_v59 = vadd.f32 %v2785_v57, %v1294_v54  ;;  %v1551_v20 = vrot.slane %v2791_v19, 2 }
 0x165   : > { %v1297_v56 = vpop.f32.mrb[6].mxu0 }
 0x166   : > { %1424 = vrot.lane.b32.xlu0 %v1303_v25, %s3254_s1  ;;  %v2901_v58 = vpop.f32.mrb[7].mxu0  ;;  %v1298_v60 = vadd.f32 %v2785_v57, %v1297_v56  ;;  %v1557_v21 = vsel %vm1555_vm5, %v1551_v20, 0  ;;  %v2796_v20 = vld [vmem:[%s3314_s19] ss:$0 sm:$0xff] }
 0x168   : > { %v1305_v61 = vpack.c.bf16 %v1298_v60, %v1295_v59 }
 0x16a   : > { %2905 = vmatmul.mubr.msk.bf16.vlgmr.msra.gmra.mrb[4].mxu1 %vm1306_vm3, %v1303_v25  ;;  %2909 = vmatpush3.bf16.msra.mxu0 %v1305_v61 }
 0x16b   : > { %2916 = vmatprep.mubr.msk.bf16.mxu1 %vm3253_vm0, %v3252_v0  ;;  %2920 = vmatprep.subr.bf16.mxu0 %v3252_v0 }
 0x1d4   : > { %v1428_v29 = vpop.permute.xlu0 %1427 }
 0x1d5   : > { %v1433_v30 = vsel %vm1306_vm3, %v1428_v29, 0 }
 0x1d6   : > { %2915 = vmatpush3.bf16.xpose.msra.mxu1 %v1433_v30  ;;  %v1604_v30 = vsel %vm1555_vm5, %v1104_v18, 0 }
 0x1d7   : > { %2926 = vmatprep.subr.bf16.mxu1 %v3252_v0 }
 0x1d8   : > { %v1425_v31 = vpop.permute.xlu0 %1424 }
 0x1dd   : > { %2917 = vmatmul.mubr.msk.bf16.vlgmr.msra.gmra.mrb[8].mxu1 %vm1306_vm3, %v1425_v31 }
 0x1de   : > { %2928 = vmatprep.mubr.msk.bf16.mxu1 %vm3253_vm0, %v3252_v0  ;;  %2927 = vmatpush3.bf16.msra.mxu1 %v1557_v21 }
 0x1df   : > { %2938 = vmatprep.subr.bf16.mxu1 %v3252_v0 }
 0x23d   : > { %v1347_v32 = vpop.f32.mrb[4].mxu1 }
 0x23e   : > { %v2906_v33 = vpop.f32.mrb[5].mxu1  ;;  %v1355_v34 = vsel %vm1354_vm4, %v1347_v32, -inf }
 0x23f   : > { %1356 = vmax.xlane.f32.xlu1 %v1355_v34  ;;  %v1350_v35 = vpop.f32.mrb[6].mxu1 }
 0x240   : > { %v2907_v36 = vpop.f32.mrb[7].mxu1  ;;  %v1358_v37 = vsel %vm1354_vm4, %v1350_v35, -inf }
 0x243   : > { %1359 = vmax.xlane.f32.xlu1 %v1358_v37 }
 0x2b0   : > { %v1469_v38 = vpop.f32.mrb[8].mxu1 }
 0x2b1   : > { %v2918_v39 = vpop.f32.mrb[9].mxu1  ;;  %v1476_v40 = vsel %vm1354_vm4, %v1469_v38, -inf }
 0x2b2   : > { %1477 = vmax.xlane.f32.xlu0 %v1476_v40  ;;  %v1472_v41 = vpop.f32.mrb[10].mxu1 }
 0x2b3   : > { %v2919_v42 = vpop.f32.mrb[11].mxu1  ;;  %v1479_v43 = vsel %vm1354_vm4, %v1472_v41, -inf }
 0x2b4   : > { %1480 = vmax.xlane.f32.xlu1 %v1479_v43 }
 0x2cc   : > { %v1357_v44 = vpop.xlane.xlu1 %1356 }
 0x2cd   : > { %v1361_v45 = vsub.f32 %v1347_v32, %v1357_v44 }
 0x2cf   : > { %v1363_v46 = vmul.f32 1.442695, %v1361_v45  ;;  %v2794_v45 = vld [vmem:[%s3304_s8] ss:$0 sm:$0xff] }
 0x2d0   : > { %v1360_v47 = vpop.xlane.xlu1 %1359 }
 0x2d1   : > { %3097 = vpow2.f32 %v1363_v46  ;;  %v1362_v48 = vsub.f32 %v1350_v35, %v1360_v47 }
 0x2d3   : > { %v1365_v49 = vmul.f32 1.442695, %v1362_v48 }
 0x2d5   : > { %3099 = vpow2.f32 %v1365_v49 }
 0x2db   : > { %v3098_v50 = vpop.eup %3097 }
 0x2dc   : > { %v1367_v51 = vsel %vm1354_vm4, %v3098_v50, 0.0 }
 0x2dd   : > { %1368 = vadd.xlane.f32.xlu1 %v1367_v51 }
 0x2df   : > { %v3100_v52 = vpop.eup %3099 }
 0x2e0   : > { %v1370_v53 = vsel %vm1354_vm4, %v3100_v52, 0.0 }
 0x2e1   : > { %1371 = vadd.xlane.f32.xlu1 %v1370_v53 }
 0x33f   : > { %v1478_v62 = vpop.xlane.xlu0 %1477 }
 0x340   : > { %v1482_v63 = vsub.f32 %v1469_v38, %v1478_v62 }
 0x341   : > { %v1481_v1 = vpop.xlane.xlu1 %1480 }
 0x342   : > { %v1484_v2 = vmul.f32 1.442695, %v1482_v63  ;;  %v1483_v4 = vsub.f32 %v1472_v41, %v1481_v1 }
 0x344   : > { %3101 = vpow2.f32 %v1484_v2  ;;  %v1486_v5 = vmul.f32 1.442695, %v1483_v4 }
 0x346   : > { %3103 = vpow2.f32 %v1486_v5 }
 0x34e   : > { %v3102_v7 = vpop.eup %3101 }
 0x34f   : > { %v1488_v8 = vsel %vm1354_vm4, %v3102_v7, 0.0 }
 0x350   : > { %v3104_v9 = vpop.eup %3103  ;;  %1489 = vadd.xlane.f32.xlu1 %v1488_v8 }
 0x351   : > { %v1491_v10 = vsel %vm1354_vm4, %v3104_v9, 0.0 }
 0x354   : > { %1492 = vadd.xlane.f32.xlu1 %v1491_v10 }
 0x365   : > { %1500 = vrot.lane.b32.xlu1 %v1305_v61, %s3254_s1  ;;  %s3761_s1 = sld [smem:[#allocation21_spill]] }
 0x36a   : > { %v1369_v11 = vpop.xlane.xlu1 %1368 }
 0x36b   : > { %3105 = vrcp.f32 %v1369_v11 }
 0x36e   : > { %v1372_v12 = vpop.xlane.xlu1 %1371 }
 0x36f   : > { %3107 = vrcp.f32 %v1372_v12 }
 0x375   : > { %v3106_v13 = vpop.eup %3105 }
 0x376   : > { %v1375_v15 = vmul.f32 %v3106_v13, %v3098_v50 }
 0x379   : > { %v3108_v14 = vpop.eup %3107 }
 0x37a   : > { %v1376_v16 = vmul.f32 %v3108_v14, %v3100_v52 }
 0x37c   : > { %v1377_v17 = vpack.c.bf16 %v1376_v16, %v1375_v15 }
 0x37e   : > { %2911 = vmatmul.mubr.msk.bf16.vlgmr.msra.gmra.mrb[8].mxu0 %vm1354_vm4, %v1377_v17  ;;  %v2795_v17 = vld [vmem:[%s3309_s14] ss:$0 sm:$0xff] }
 0x37f   : > { %2922 = vmatprep.mubr.msk.bf16.mxu0 %vm3253_vm0, %v3252_v0 }
 0x3dd   : > { %v1490_v22 = vpop.xlane.xlu1 %1489 }
 0x3de   : > { %3109 = vrcp.f32 %v1490_v22 }
 0x3e1   : > { %v1493_v23 = vpop.xlane.xlu1 %1492 }
 0x3e2   : > { %3111 = vrcp.f32 %v1493_v23 }
 0x3e5   : > { %v1501_v24 = vpop.permute.xlu1 %1500 }
 0x3e6   : > { %2921 = vmatpush3.bf16.msra.mxu0 %v1501_v24  ;;  %v3089_v24 = vld [vmem:[%s3329_s6] sm:$0xff]  }
 0x3e7   : > { %2932 = vmatprep.subr.bf16.mxu0 %v3252_v0 }
 0x3e8   : > { %v3110_v25 = vpop.eup %3109 }
 0x3e9   : > { %v1496_v27 = vmul.f32 %v3110_v25, %v3102_v7  ;;  %v1108_v7 = vld [vmem:[%s3319_s24] sm:$0xf] }
 0x3ea   : > { %v1711_v8 = vsel %vm1156_vm1, %v1108_v7, 0  ;;  %v3090_v25 = vld [vmem:[%s3349_s4] sm:$0xff]  }
 0x3ec   : > { %v3112_v26 = vpop.eup %3111 }
 0x3ed   : > { %v1497_v28 = vmul.f32 %v3112_v26, %v3104_v9 }
 0x3ef   : > { %v1498_v29 = vpack.c.bf16 %v1497_v28, %v1496_v27  ;;  %v3091_v28 = vld [vmem:[%s3329_s6 + $0x8] sm:$0xff]  }
 0x3f1   : > { %2923 = vmatmul.mubr.msk.bf16.vlgmr.msra.gmra.mrb[12].mxu0 %vm1354_vm4, %v1498_v29  ;;  %v3093_v29 = vld [vmem:[%s3753_s2] sm:$0xff]   ;;  %s3762_s2 = sld [smem:[#allocation19_spill]] }
 0x3f2   : > { %2933 = vmatpush3.bf16.msra.mxu0 %v1604_v30  ;;  %2934 = vmatprep.mubr.msk.bf16.mxu0 %vm3253_vm0, %v3252_v0  ;;  %v2797_v30 = vld [vmem:[%s3754_s7] ss:$0 sm:$0xff]  ;;  %s3763_s7 = sld [smem:[#allocation20_spill]] }
 0x3f3   : > { %2944 = vmatprep.subr.bf16.mxu0 %v3252_v0 }
 0x451   : > { %v1415_v31 = vpop.f32.mrb[8].mxu0 }
 0x452   : > { %v2912_v32 = vpop.f32.mrb[9].mxu0 }
 0x453   : > { %v1418_v33 = vpop.f32.mrb[10].mxu0 }
 0x454   : > { %v1422_v34 = vpack.c.bf16 %v1418_v33, %v1415_v31  ;;  %v2913_v35 = vpop.f32.mrb[11].mxu0 }
 0x456   : > { %2935 = vmatmul.mubr.msk.bf16.vlgmr.msra.gmra.mrb[16].mxu0 %vm1306_vm3, %v1422_v34 }
 0x457   : > { %2948 = vmatprep.mubr.msk.bf16.mxu0 %vm3253_vm0, %v3252_v0  ;;  %2945 = vmatpush3.bf16.msra.mxu0 %v3089_v24 }
 0x458   : > { %2946 = vmatprep.subr.bf16.mxu0 %v3252_v0 }
 0x45b   : > { %2947 = vmatpush3.bf16.msra.mxu0 %v3091_v28 }
 0x45c   : > { %2958 = vmatprep.subr.bf16.mxu0 %v3252_v0 }
 0x4c4   : > { %v1540_v36 = vpop.f32.mrb[12].mxu0 }
 0x4c5   : > { %v2924_v37 = vpop.f32.mrb[13].mxu0 }
 0x4c6   : > { %v1543_v38 = vpop.f32.mrb[14].mxu0 }
 0x4c7   : > { %v1547_v39 = vpack.c.bf16 %v1543_v38, %v1540_v36  ;;  %v2925_v40 = vpop.f32.mrb[15].mxu0 }
 0x4c9   : > { %2929 = vmatmul.mubr.msk.bf16.vlgmr.msra.gmra.mrb[12].mxu1 %vm1306_vm3, %v1547_v39 }
 0x4ca   : > { %2940 = vmatprep.mubr.msk.bf16.mxu1 %vm3253_vm0, %v3252_v0  ;;  %2939 = vmatpush3.bf16.msra.mxu1 %v1711_v8 }
 0x4cb   : > { %2952 = vmatprep.subr.bf16.mxu1 %v3252_v0 }
 0x529   : > { %v1640_v41 = vpop.f32.mrb[16].mxu0 }
 0x52a   : > { %v2936_v42 = vpop.f32.mrb[17].mxu0 }
 0x52b   : > { %v1643_v43 = vpop.f32.mrb[18].mxu0 }
 0x52c   : > { %v2937_v44 = vpop.f32.mrb[19].mxu0 }
 0x59c   : > { %v1593_v46 = vpop.f32.mrb[12].mxu1 }
 0x59d   : > { %v1641_v47 = vadd.f32 %v1640_v41, %v1593_v46  ;;  %v2930_v48 = vpop.f32.mrb[13].mxu1 }
 0x59e   : > { %v1596_v49 = vpop.f32.mrb[14].mxu1 }
 0x59f   : > { %v1653_v50 = vadd.f32 %v2794_v45, %v1641_v47  ;;  %v1644_v51 = vadd.f32 %v1643_v43, %v1596_v49  ;;  %v2931_v52 = vpop.f32.mrb[15].mxu1 }
 0x5a1   : > { %v1654_v53 = vadd.f32 %v2794_v45, %v1644_v51  ;;  %v1655_v54 = vadd.f32 %v1653_v50, %v3524_v3 }
 0x5a3   : > { %v1657_v55 = vsel %vm1152_vm2, %v1655_v54, 0.0  ;;  %v1656_v56 = vadd.f32 %v1654_v53, %v3528_v6 }
 0x5a4   : > { %1658 = vadd.xlane.f32.xlu0 %v1657_v55  ;;  %v3092_v55 = vld [vmem:[%s3755_s10] sm:$0xff]   ;;  %s3764_s10 = sld [smem:[#allocation23_spill]] }
 0x5a5   : > { %v1660_v57 = vsel %vm1152_vm2, %v1656_v56, 0.0 }
 0x5a8   : > { %1661 = vadd.xlane.f32.xlu0 %v1660_v57 }
 0x631   : > { %v1659_v58 = vpop.xlane.xlu0 %1658 }
 0x632   : > { %v1664_v59 = vmul.f32 0.125, %v1659_v58 }
 0x634   : > { %v1666_v60 = vsub.f32 %v1655_v54, %v1664_v59 }
 0x635   : > { %v1662_v61 = vpop.xlane.xlu0 %1661 }
 0x636   : > { %v1665_v62 = vmul.f32 0.125, %v1662_v61  ;;  %v1668_v63 = vmul.f32 %v1666_v60, %v1666_v60 }
 0x638   : > { %v1667_v1 = vsub.f32 %v1656_v56, %v1665_v62  ;;  %v1670_v2 = vsel %vm1152_vm2, %v1668_v63, 0.0 }
 0x639   : > { %1671 = vadd.xlane.f32.xlu1 %v1670_v2 }
 0x63a   : > { %v1669_v4 = vmul.f32 %v1667_v1, %v1667_v1 }
 0x63c   : > { %v1673_v5 = vsel %vm1152_vm2, %v1669_v4, 0.0 }
 0x63d   : > { %1674 = vadd.xlane.f32.xlu0 %v1673_v5 }
 0x66a   : > { %1880 = vxpose.xlu0.b32.start [1/2] (short) (narrow) %v3524_v3, 8 }
 0x66e   : > { %1881 = vxpose.xlu0.b32.end [2/2] (short) (narrow) %v3528_v6, 8 }
 0x6c6   : > { %v1672_v9 = vpop.xlane.xlu1 %1671 }
 0x6c7   : > { %v1676_v10 = vmul.f32 0.125, %v1672_v9 }
 0x6c9   : > { %v1678_v11 = vadd.f32 1e-05, %v1676_v10 }
 0x6ca   : > { %v1675_v12 = vpop.xlane.xlu0 %1674 }
 0x6cb   : > { %3113 = vrsqrt.f32 %v1678_v11  ;;  %v1677_v13 = vmul.f32 0.125, %v1675_v12  ;;  %v2805_v12 = vld [vmem:[%s3757_s15] ss:$0 sm:$0xff]  ;;  %s3766_s15 = sld [smem:[#allocation9_spill]] }
 0x6cd   : > { %v1679_v14 = vadd.f32 1e-05, %v1677_v13  ;;  %v2808_v13 = vld [vmem:[%s3758_s16] ss:$0 sm:$0xff]  ;;  %s3767_s16 = sld [smem:[#allocation24_spill]] }
 0x6cf   : > { %3115 = vrsqrt.f32 %v1679_v14 }
 0x6d5   : > { %v3114_v15 = vpop.eup %3113 }
 0x6d6   : > { %v1682_v16 = vmul.f32 %v3114_v15, %v1666_v60  ;;  %v2811_v60 = vld [vmem:[%s3756_s11] ss:$0 sm:$0xff]  ;;  %s3765_s11 = sld [smem:[#allocation22_spill]] }
 0x6d8   : > { %v1690_v19 = vmul.f32 %v2795_v17, %v1682_v16 }
 0x6d9   : > { %v3116_v18 = vpop.eup %3115 }
 0x6da   : > { %v1683_v3 = vmul.f32 %v3116_v18, %v1667_v1  ;;  %v3603_v6 = vadd.f32 %v2796_v20, %v1690_v19 }
 0x6dc   : > { %v1691_v21 = vmul.f32 %v2795_v17, %v1683_v3 }
 0x6de   : > { %v3605_v22 = vadd.f32 %v2796_v20, %v1691_v21 }
 0x6e0   : > { %v1700_v23 = vpack.c.bf16 %v3605_v22, %v3603_v6 }
 0x6e2   : > { %2941 = vmatmul.mubr.msk.bf16.vlgmr.msra.gmra.mrb[16].mxu1 %vm1152_vm2, %v1700_v23 }
 0x6e3   : > { %2954 = vmatprep.mubr.msk.bf16.mxu1 %vm3253_vm0, %v3252_v0  ;;  %2953 = vmatpush3.bf16.msra.mxu1 %v3090_v25 }
 0x6e4   : > { %2964 = vmatprep.subr.bf16.mxu1 %v3252_v0 }
 0x6ea   : > { %v3614_v26 = vpop.trf.xlu0 }
 0x6eb   : > { %v1912_v27 = vpack.c.bf16 %v3614_v26, %v3614_v26 }
 0x6ed   : > { %2955 = vmatmul.mubr.msk.bf16.vlgmr.msra.gmra.mrb[20].mxu1 %vm1354_vm4, %v1912_v27 }
 0x6ee   : > { %2966 = vmatprep.mubr.msk.bf16.mxu1 %vm3253_vm0, %v3252_v0  ;;  %2965 = vmatpush3.bf16.msra.mxu1 %v3093_v29 }
 0x6ef   : > { %2976 = vmatprep.subr.bf16.mxu1 %v3252_v0 }
 0x6f5   : > { %2967 = vmatmul.mubr.msk.bf16.vlgmr.msra.gmra.mrb[24].mxu1 %vm1354_vm4, %v1912_v27 }
 0x6f6   : > { %2978 = vmatprep.mubr.msk.bf16.mxu1 %vm3253_vm0, %v3252_v0 }
 0x7b5   : > { %v1747_v31 = vpop.f32.mrb[16].mxu1 }
 0x7b6   : > { %v1748_v32 = vadd.f32 %v2797_v30, %v1747_v31  ;;  %v2942_v33 = vpop.f32.mrb[17].mxu1 }
 0x7b7   : > { %v1750_v34 = vpop.f32.mrb[18].mxu1 }
 0x7b8   : > { %v1754_v35 = vmul.f32 %v1748_v32, %v1748_v32  ;;  %v1751_v36 = vadd.f32 %v2797_v30, %v1750_v34  ;;  %v2943_v37 = vpop.f32.mrb[19].mxu1 }
 0x7ba   : > { %v1756_v38 = vmul.f32 %v1754_v35, %v1748_v32  ;;  %v1755_v39 = vmul.f32 %v1751_v36, %v1751_v36 }
 0x7bc   : > { %v1758_v40 = vmul.f32 0.044715, %v1756_v38  ;;  %v1757_v41 = vmul.f32 %v1755_v39, %v1751_v36 }
 0x7be   : > { %v1760_v42 = vadd.f32 %v1758_v40, %v1748_v32  ;;  %v1759_v43 = vmul.f32 0.044715, %v1757_v41 }
 0x7c0   : > { %v1762_v44 = vmul.f32 0.7978846, %v1760_v42  ;;  %v1761_v45 = vadd.f32 %v1759_v43, %v1751_v36  ;;  %v1962_v57 = vpop.f32.mrb[20].mxu1 }
 0x7c1   : > { %v2956_v58 = vpop.f32.mrb[21].mxu1  ;;  %v1963_v14 = vadd.f32 %v2805_v12, %v1962_v57 }
 0x7c2   : > { %3117 = vtanh.f32 %v1762_v44  ;;  %v1763_v46 = vmul.f32 0.7978846, %v1761_v45  ;;  %v1965_v59 = vpop.f32.mrb[22].mxu1  ;;  %v1126_v58 = vld [vmem:[%s3759_s26] sm:$0xf] }
 0x7c3   : > { %v2957_v61 = vpop.f32.mrb[23].mxu1  ;;  %v2072_v19 = vmul.f32 0.35355338, %v1963_v14 }
 0x7c4   : > { %3119 = vtanh.f32 %v1763_v46  ;;  %v2345_v61 = vsel %vm1156_vm1, %v1126_v58, 0 }
 0x7c5   : > { %v2073_v23 = vpack.c.bf16 %v2072_v19, %v2072_v19 }
 0x7c8   : > { %v2066_v62 = vpop.f32.mrb[24].mxu1 }
 0x7c9   : > { %v2067_v63 = vadd.f32 %v2811_v60, %v2066_v62  ;;  %v2968_v1 = vpop.f32.mrb[25].mxu1 }
 0x7ca   : > { %v2069_v2 = vpop.f32.mrb[26].mxu1 }
 0x7cb   : > { %v2075_v4 = vpack.c.bf16 %v2067_v63, %v2067_v63  ;;  %v2969_v5 = vpop.f32.mrb[27].mxu1 }
 0x7cc   : > { %v3118_v47 = vpop.eup %3117 }
 0x7cd   : > { %v1766_v48 = vadd.f32 1.0, %v3118_v47  ;;  %v2138_v7 = vsel %vm1156_vm1, %v2075_v4, 0 }
 0x7ce   : > { %v3120_v49 = vpop.eup %3119  ;;  %2977 = vmatpush3.bf16.msra.mxu1 %v2138_v7 }
 0x7cf   : > { %v1768_v50 = vmul.f32 0.5, %v1766_v48  ;;  %v1767_v51 = vadd.f32 1.0, %v3120_v49  ;;  %2988 = vmatprep.subr.bf16.mxu1 %v3252_v0 }
 0x7d1   : > { %v1769_v52 = vmul.f32 0.5, %v1767_v51  ;;  %v1770_v53 = vmul.f32 %v1768_v50, %v1748_v32 }
 0x7d3   : > { %v1771_v54 = vmul.f32 %v1769_v52, %v1751_v36 }
 0x7d5   : > { %v1772_v56 = vpack.c.bf16 %v1771_v54, %v1770_v53  ;;  %v1127_v54 = vld [vmem:[%s3759_s26 + $0x4] sm:$0xf] }
 0x7d7   : > { %2949 = vmatmul.mubr.msk.bf16.vlgmr.msra.gmra.mrb[20].mxu0 %vm1791_vm6, %v1772_v56 }
 0x7d8   : > { %2959 = vmatpush3.bf16.msra.mxu0 %v3092_v55  ;;  %2960 = vmatprep.mubr.msk.bf16.mxu0 %vm3253_vm0, %v3252_v0  ;;  %v2299_v55 = vsel %vm1156_vm1, %v1127_v54, 0 }
 0x7d9   : > { %2970 = vmatprep.subr.bf16.mxu0 %v3252_v0 }
 0x7df   : > { %2961 = vmatmul.mubr.msk.bf16.vlgmr.msra.gmra.mrb[24].mxu0 %vm1354_vm4, %v1912_v27 }
 0x7e0   : > { %2972 = vmatprep.mubr.msk.bf16.mxu0 %vm3253_vm0, %v3252_v0 }
 0x8aa   : > { %v3642_v8 = vpop.f32.mrb[20].mxu0 }
 0x8ab   : > { %v2950_v9 = vpop.f32.mrb[21].mxu0 }
 0x8ac   : > { %v3644_v10 = vpop.f32.mrb[22].mxu0 }
 0x8ad   : > { %v2951_v11 = vpop.f32.mrb[23].mxu0 }
 0x8b2   : > { %v2014_v15 = vpop.f32.mrb[24].mxu0 }
 0x8b3   : > { %v2015_v16 = vadd.f32 %v2808_v13, %v2014_v15  ;;  %v2962_v17 = vpop.f32.mrb[25].mxu0 }
 0x8b4   : > { %v2017_v18 = vpop.f32.mrb[26].mxu0  ;;  %v2820_v17 = vld [vmem:[%s3760_s28] ss:$0 sm:$0xff]  ;;  %s3769_s28 = sld [smem:[#allocation10_spill]] }
 0x8b5   : > { %v2074_v3 = vpack.c.bf16 %v2015_v16, %v2015_v16  ;;  %v2963_v20 = vpop.f32.mrb[27].mxu0 }
 0x8b7   : > { %v2080_v21 = vsel %vm1152_vm2, %v2074_v3, 0  ;;  %2185 = vrot.lane.b32.xlu1 %v2074_v3, %s3255_s18 }
 0x8b8   : > { %2971 = vmatpush3.bf16.xpose.msra.mxu0 %v2080_v21 }
 0x8b9   : > { %2982 = vmatprep.subr.bf16.mxu0 %v3252_v0 }
 0x8bb   : > { %2182 = vrot.lane.b32.xlu1 %v2073_v23, %s3255_s18 }
 0x8bf   : > { %2973 = vmatmul.mubr.msk.bf16.vlgmr.msra.gmra.mrb[28].mxu0 %vm1152_vm2, %v2073_v23 }
 0x8c0   : > { %2984 = vmatprep.mubr.msk.bf16.mxu0 %vm3253_vm0, %v3252_v0 }
 0x929   : > { %v2186_v24 = vpop.permute.xlu1 %2185 }
 0x92a   : > { %v2191_v25 = vsel %vm1152_vm2, %v2186_v24, 0 }
 0x92b   : > { %2983 = vmatpush3.bf16.xpose.msra.mxu0 %v2191_v25 }
 0x92c   : > { %2994 = vmatprep.subr.bf16.mxu0 %v3252_v0 }
 0x92d   : > { %v2183_v27 = vpop.permute.xlu1 %2182 }
 0x932   : > { %2985 = vmatmul.mubr.msk.bf16.vlgmr.msra.gmra.mrb[32].mxu0 %vm1152_vm2, %v2183_v27 }
 0x933   : > { %2996 = vmatprep.mubr.msk.bf16.mxu0 %vm3253_vm0, %v3252_v0  ;;  %2995 = vmatpush3.bf16.msra.mxu0 %v2299_v55 }
 0x934   : > { %3006 = vmatprep.subr.bf16.mxu0 %v3252_v0 }
 0x992   : > { %v2116_v28 = vpop.f32.mrb[28].mxu0 }
 0x993   : > { %v2974_v29 = vpop.f32.mrb[29].mxu0  ;;  %v2122_v30 = vsel %vm1152_vm2, %v2116_v28, -inf }
 0x994   : > { %2123 = vmax.xlane.f32.xlu0 %v2122_v30  ;;  %v2119_v31 = vpop.f32.mrb[30].mxu0 }
 0x995   : > { %v2975_v32 = vpop.f32.mrb[31].mxu0 }
 0x996   : > { %v3094_v32 = vld [vmem:[%s3761_s1] sm:$0xff]   ;;  %s3770_s1 = sld [smem:[#allocation11_spill]] }
 0x9aa   : > { %2246 = vrot.lane.b32.xlu0 %v2075_v4, %s3255_s18  ;;  %s3768_s18 = sld [smem:[#allocation25_spill]] }
 0xa05   : > { %v2227_v33 = vpop.f32.mrb[32].mxu0 }
 0xa06   : > { %v2986_v34 = vpop.f32.mrb[33].mxu0  ;;  %v2233_v35 = vsel %vm1152_vm2, %v2227_v33, -inf }
 0xa07   : > { %2234 = vmax.xlane.f32.xlu1 %v2233_v35  ;;  %v2230_v36 = vpop.f32.mrb[34].mxu0 }
 0xa08   : > { %v2987_v37 = vpop.f32.mrb[35].mxu0  ;;  %v2821_v36 = vld [vmem:[%s3762_s2] ss:$0 sm:$0xff]  ;;  %s1096_s2 = scalar_lea.vmem %s3439_s20, %s2836_s0 }
 0xa21   : > { %v2124_v38 = vpop.xlane.xlu0 %2123 }
 0xa22   : > { %v2125_v39 = vsub.f32 %v2116_v28, %v2124_v38  ;;  %v2822_v38 = vld [vmem:[%s3763_s7] ss:$0 sm:$0xff] }
 0xa24   : > { %v2126_v40 = vmul.f32 1.442695, %v2125_v39 }
 0xa25   : > { %v2247_v51 = vpop.permute.xlu0 %2246 }
 0xa26   : > { %3121 = vpow2.f32 %v2126_v40  ;;  %v2252_v53 = vsel %vm1156_vm1, %v2247_v51, 0 }
 0xa30   : > { %v3122_v41 = vpop.eup %3121 }
 0xa31   : > { %v2128_v42 = vsel %vm1152_vm2, %v3122_v41, 0.0 }
 0xa32   : > { %2129 = vadd.xlane.f32.xlu1 %v2128_v42  ;;  %v3095_v42 = vld [vmem:[%s3764_s10] sm:$0xff]  }
 0xa94   : > { %v2235_v43 = vpop.xlane.xlu1 %2234 }
 0xa95   : > { %v2236_v44 = vsub.f32 %v2227_v33, %v2235_v43  ;;  %v3096_v43 = vld [vmem:[%s3764_s10 + $0x8] sm:$0xff]  }
 0xa97   : > { %v2237_v45 = vmul.f32 1.442695, %v2236_v44  ;;  %v2823_v44 = vld [vmem:[%s3765_s11] ss:$0 sm:$0xff] }
 0xa99   : > { %3123 = vpow2.f32 %v2237_v45 }
 0xaa3   : > { %v3124_v46 = vpop.eup %3123 }
 0xaa4   : > { %v2239_v47 = vsel %vm1152_vm2, %v3124_v46, 0.0 }
 0xaa5   : > { %2240 = vadd.xlane.f32.xlu1 %v2239_v47 }
 0xabf   : > { %v2130_v48 = vpop.xlane.xlu1 %2129 }
 0xac0   : > { %3125 = vrcp.f32 %v2130_v48 }
 0xaca   : > { %v3126_v49 = vpop.eup %3125 }
 0xacb   : > { %v2132_v50 = vmul.f32 %v3126_v49, %v3122_v41 }
 0xacd   : > { %v2133_v52 = vpack.c.bf16 %v2132_v50, %v2132_v50 }
 0xacf   : > { %2979 = vmatmul.mubr.msk.bf16.vlgmr.msra.gmra.mrb[28].mxu1 %vm1152_vm2, %v2133_v52 }
 0xad0   : > { %2989 = vmatpush3.bf16.msra.mxu1 %v2252_v53  ;;  %2990 = vmatprep.mubr.msk.bf16.mxu1 %vm3253_vm0, %v3252_v0 }
 0xad1   : > { %3000 = vmatprep.subr.bf16.mxu1 %v3252_v0 }
 0xb32   : > { %v2241_v56 = vpop.xlane.xlu1 %2240 }
 0xb33   : > { %3127 = vrcp.f32 %v2241_v56 }
 0xb3d   : > { %v3128_v57 = vpop.eup %3127 }
 0xb3e   : > { %v2243_v59 = vmul.f32 %v3128_v57, %v3124_v46 }
 0xb40   : > { %v2244_v60 = vpack.c.bf16 %v2243_v59, %v2243_v59  ;;  %v2799_v59 = vld [vmem:[%s3766_s15] ss:$0 sm:$0xff] }
 0xb42   : > { %2991 = vmatmul.mubr.msk.bf16.vlgmr.msra.gmra.mrb[32].mxu1 %vm1152_vm2, %v2244_v60  ;;  %v2826_v60 = vld [vmem:[%s3767_s16] ss:$0 sm:$0xff] }
 0xb43   : > { %3001 = vmatpush3.bf16.msra.mxu1 %v2345_v61  ;;  %3002 = vmatprep.mubr.msk.bf16.mxu1 %vm3253_vm0, %v3252_v0 }
 0xb44   : > { %3012 = vmatprep.subr.bf16.mxu1 %v3252_v0 }
 0xba2   : > { %v2174_v62 = vpop.f32.mrb[28].mxu1 }
 0xba3   : > { %v2180_v63 = vpack.c.bf16 %v2174_v62, %v2174_v62  ;;  %v2980_v1 = vpop.f32.mrb[29].mxu1  ;;  %v1830_v62 = vadd.f32 %v2799_v59, %v3642_v8 }
 0xba4   : > { %v2177_v2 = vpop.f32.mrb[30].mxu1 }
 0xba5   : > { %v2981_v4 = vpop.f32.mrb[31].mxu1  ;;  %3003 = vmatmul.mubr.msk.bf16.vlgmr.msra.gmra.mrb[36].mxu1 %vm1152_vm2, %v2180_v63 }
 0xba6   : > { %3016 = vmatprep.mubr.msk.bf16.mxu1 %vm3253_vm0, %v3252_v0  ;;  %3013 = vmatpush3.bf16.msra.mxu1 %v3095_v42 }
 0xba7   : > { %3014 = vmatprep.subr.bf16.mxu1 %v3252_v0 }
 0xbaa   : > { %3015 = vmatpush3.bf16.msra.mxu1 %v3096_v43 }
 0xc15   : > { %v2288_v5 = vpop.f32.mrb[32].mxu1 }
 0xc16   : > { %v2294_v7 = vpack.c.bf16 %v2288_v5, %v2288_v5  ;;  %v2992_v9 = vpop.f32.mrb[33].mxu1 }
 0xc17   : > { %v2291_v11 = vpop.f32.mrb[34].mxu1 }
 0xc18   : > { %v2993_v12 = vpop.f32.mrb[35].mxu1  ;;  %2997 = vmatmul.mubr.msk.bf16.vlgmr.msra.gmra.mrb[36].mxu0 %vm1152_vm2, %v2294_v7  ;;  %v1833_v7 = vadd.f32 %v2799_v59, %v3644_v10  ;;  %v1836_v11 = vadd.f32 %v1830_v62, %v3603_v6 }
 0xc19   : > { %3008 = vmatprep.mubr.msk.bf16.mxu0 %vm3253_vm0, %v3252_v0  ;;  %3007 = vmatpush3.bf16.msra.mxu0 %v3094_v32 }
 0xc1a   : > { %v1838_v12 = vsel %vm1152_vm2, %v1836_v11, 0.0 }
 0xc78   : > { %v2381_v13 = vpop.f32.mrb[36].mxu1 }
 0xc79   : > { %v3004_v14 = vpop.f32.mrb[37].mxu1 }
 0xc7a   : > { %v2384_v15 = vpop.f32.mrb[38].mxu1 }
 0xc7b   : > { %v3005_v16 = vpop.f32.mrb[39].mxu1 }
 0xceb   : > { %v2335_v18 = vpop.f32.mrb[36].mxu0 }
 0xcec   : > { %v2382_v19 = vadd.f32 %v2381_v13, %v2335_v18  ;;  %v2998_v3 = vpop.f32.mrb[37].mxu0  ;;  %v1837_v13 = vadd.f32 %v1833_v7, %v3605_v22 }
 0xced   : > { %v2338_v20 = vpop.f32.mrb[38].mxu0 }
 0xcee   : > { %v2393_v21 = vadd.f32 %v2820_v17, %v2382_v19  ;;  %v2999_v23 = vpop.f32.mrb[39].mxu0  ;;  %v1841_v14 = vsel %vm1152_vm2, %v1837_v13, 0.0 }
 0xcf0   : > { %v2394_v24 = vadd.f32 %v2393_v21, %v3614_v26 }
 0xcf2   : > { %v2395_v25 = vsel %vm1354_vm4, %v2394_v24, 0.0 }
 0xcf3   : > { %2396 = vadd.xlane.f32.xlu1 %v2395_v25 }
 0xd80   : > { %v2397_v27 = vpop.xlane.xlu1 %2396 }
 0xd81   : > { %v2399_v28 = vmul.f32 0.0625, %v2397_v27 }
 0xd83   : > { %v2400_v29 = vsub.f32 %v2394_v24, %v2399_v28 }
 0xd85   : > { %v2401_v30 = vmul.f32 %v2400_v29, %v2400_v29 }
 0xd87   : > { %v2402_v31 = vsel %vm1354_vm4, %v2401_v30, 0.0 }
 0xd88   : > { %2403 = vadd.xlane.f32.xlu1 %v2402_v31  ;;  %v2830_v31 = vld [vmem:[%s3768_s18] ss:$0 sm:$0xff] }
 0xe15   : > { %v2404_v33 = vpop.xlane.xlu1 %2403 }
 0xe16   : > { %v2405_v34 = vmul.f32 0.0625, %v2404_v33  ;;  %v2831_v33 = vld [vmem:[%s3424_s27] ss:$0 sm:$0xff] }
 0xe18   : > { %v2406_v26 = vadd.f32 1e-05, %v2405_v34 }
 0xe1a   : > { %3129 = vrsqrt.f32 %v2406_v26 }
 0xe24   : > { %v3130_v35 = vpop.eup %3129 }
 0xe25   : > { %v2408_v37 = vmul.f32 %v3130_v35, %v2400_v29 }
 0xe27   : > { %v2415_v39 = vmul.f32 %v2821_v36, %v2408_v37 }
 0xe29   : > { %v2422_v40 = vadd.f32 %v2822_v38, %v2415_v39 }
 0xe2b   : > { %v2423_v41 = vpack.c.bf16 %v2422_v40, %v2422_v40 }
 0xe2d   : > { %3009 = vmatmul.mubr.msk.bf16.vlgmr.msra.gmra.mrb[40].mxu0 %vm1354_vm4, %v2423_v41 }
 0xf00   : > { %v2473_v45 = vpop.f32.mrb[40].mxu0 }
 0xf01   : > { %v2474_v46 = vadd.f32 %v2823_v44, %v2473_v45  ;;  %v3010_v47 = vpop.f32.mrb[41].mxu0  ;;  %v2803_v44 = vld [vmem:[%s3769_s28] ss:$0 sm:$0xff] }
 0xf02   : > { %v2476_v48 = vpop.f32.mrb[42].mxu0  ;;  %v2804_v47 = vld [vmem:[%s3770_s1] ss:$0 sm:$0xff] }
 0xf03   : > { %v2479_v49 = vmul.f32 %v2474_v46, %v2474_v46  ;;  %v3011_v50 = vpop.f32.mrb[43].mxu0 }
 0xf05   : > { %v2480_v51 = vmul.f32 %v2479_v49, %v2474_v46 }
 0xf07   : > { %v2481_v52 = vmul.f32 0.044715, %v2480_v51 }
 0xf09   : > { %v2482_v53 = vadd.f32 %v2481_v52, %v2474_v46 }
 0xf0b   : > { %v2483_v54 = vmul.f32 0.7978846, %v2482_v53 }
 0xf0d   : > { %3131 = vtanh.f32 %v2483_v54 }
 0xf17   : > { %v3132_v55 = vpop.eup %3131 }
 0xf18   : > { %v2485_v56 = vadd.f32 1.0, %v3132_v55 }
 0xf1a   : > { %v2486_v57 = vmul.f32 0.5, %v2485_v56 }
 0xf1c   : > { %v2487_v0 = vmul.f32 %v2486_v57, %v2474_v46 }
 0xf1e   : > { %v2488_v58 = vpack.c.bf16 %v2487_v0, %v2487_v0 }
 0xf20   : > { %3017 = vmatmul.mubr.msk.bf16.vlgmr.msra.gmra.mrb[40].mxu1 %vm1791_vm6, %v2488_v58 }
 0xff3   : > { %v2544_v61 = vpop.f32.mrb[40].mxu1 }
 0xff4   : > { %v2545_v63 = vadd.f32 %v2826_v60, %v2544_v61  ;;  %v3018_v1 = vpop.f32.mrb[41].mxu1 }
 0xff5   : > { %v2547_v2 = vpop.f32.mrb[42].mxu1 }
 0xff6   : > { %v3019_v4 = vpop.f32.mrb[43].mxu1  ;;  %v2550_v5 = vadd.f32 %v2545_v63, %v2422_v40 }
 0xff8   : > { %v2551_v9 = vsel %vm1354_vm4, %v2550_v5, 0.0 }
 0xff9   : > { %2552 = vadd.xlane.f32.xlu1 %v2551_v9 }
 0xffd   : > { %1839 = vadd.xlane.f32.xlu1 %v1838_v12 }
0x1001   : > { %1842 = vadd.xlane.f32.xlu1 %v1841_v14  ;;  %v2832_v14 = vld [vmem:[#allocation2] ss:$0 sm:$0xff] }
0x1086   : > { %v2553_v8 = vpop.xlane.xlu1 %2552 }
0x1087   : > { %v2554_v15 = vmul.f32 0.0625, %v2553_v8 }
0x1089   : > { %v2555_v16 = vsub.f32 %v2550_v5, %v2554_v15  ;;  %v2833_v15 = vld [vmem:[#allocation4] ss:$0 sm:$0xff] }
0x108a   : > { %v1840_v17 = vpop.xlane.xlu1 %1839 }
0x108b   : > { %v1844_v18 = vmul.f32 0.125, %v1840_v17  ;;  %v2556_v19 = vmul.f32 %v2555_v16, %v2555_v16 }
0x108d   : > { %v1846_v10 = vsub.f32 %v1836_v11, %v1844_v18  ;;  %v2557_v3 = vsel %vm1354_vm4, %v2556_v19, 0.0 }
0x108e   : > { %2558 = vadd.xlane.f32.xlu1 %v2557_v3  ;;  %v1843_v6 = vpop.xlane.xlu1 %1842 }
0x108f   : > { %v1845_v20 = vmul.f32 0.125, %v1843_v6  ;;  %v1848_v21 = vmul.f32 %v1846_v10, %v1846_v10 }
0x1091   : > { %v1847_v22 = vsub.f32 %v1837_v13, %v1845_v20  ;;  %v1850_v23 = vsel %vm1152_vm2, %v1848_v21, 0.0 }
0x1092   : > { %1851 = vadd.xlane.f32.xlu0 %v1850_v23 }
0x1093   : > { %v1849_v24 = vmul.f32 %v1847_v22, %v1847_v22 }
0x1095   : > { %v1853_v25 = vsel %vm1152_vm2, %v1849_v24, 0.0 }
0x1096   : > { %1854 = vadd.xlane.f32.xlu1 %v1853_v25 }
0x111b   : > { %v2559_v27 = vpop.xlane.xlu1 %2558 }
0x111c   : > { %v2560_v28 = vmul.f32 0.0625, %v2559_v27 }
0x111e   : > { %v2561_v29 = vadd.f32 1e-05, %v2560_v28 }
0x111f   : > { %v1852_v35 = vpop.xlane.xlu0 %1851 }
0x1120   : > { %3133 = vrsqrt.f32 %v2561_v29  ;;  %v1856_v36 = vmul.f32 0.125, %v1852_v35 }
0x1122   : > { %v1858_v38 = vadd.f32 1e-05, %v1856_v36 }
0x1123   : > { %v1855_v37 = vpop.xlane.xlu1 %1854 }
0x1124   : > { %v1857_v39 = vmul.f32 0.125, %v1855_v37  ;;  %3135 = vrsqrt.f32 %v1858_v38 }
0x1126   : > { %v1859_v40 = vadd.f32 1e-05, %v1857_v39 }
0x1128   : > { %3137 = vrsqrt.f32 %v1859_v40 }
0x112a   : > { %v3134_v30 = vpop.eup %3133 }
0x112b   : > { %v2563_v32 = vmul.f32 %v3134_v30, %v2555_v16 }
0x112d   : > { %v2570_v34 = vmul.f32 %v2830_v31, %v2563_v32 }
0x112e   : > { %v3136_v41 = vpop.eup %3135 }
0x112f   : > { %v2577_v26 = vadd.f32 %v2831_v33, %v2570_v34  ;;  %v1862_v42 = vmul.f32 %v3136_v41, %v1846_v10 }
0x1131   : > { %2578 = vxpose.xlu1.b32.start.end [1/1] (short) (narrow) %v2577_v26, 16  ;;  %v1870_v45 = vmul.f32 %v2803_v44, %v1862_v42 }
0x1132   : > { %v3138_v43 = vpop.eup %3137 }
0x1133   : > { %v1863_v46 = vmul.f32 %v3138_v43, %v1847_v22  ;;  %v1878_v48 = vadd.f32 %v2804_v47, %v1870_v45 }
0x1135   : > { %v1871_v49 = vmul.f32 %v2803_v44, %v1863_v46 }
0x1137   : > { %v1879_v53 = vadd.f32 %v2804_v47, %v1871_v49 }
0x11b1   : > { %v2594_v50 = vpop.trf.xlu1 }
0x11b2   : > { %v2610_v51 = vadd.f32 %v2594_v50, %v1878_v48 }
0x11b4   : > { %v2612_v52 = vsel %vm1152_vm2, %v2610_v51, 0.0 }
0x11b5   : > { %2613 = vadd.xlane.f32.xlu0 %v2612_v52  ;;  %v2595_v54 = vpop.trf.xlu1 }
0x11b6   : > { %v2611_v55 = vadd.f32 %v2595_v54, %v1879_v53 }
0x11b8   : > { %v2615_v56 = vsel %vm1152_vm2, %v2611_v55, 0.0 }
0x11b9   : > { %2616 = vadd.xlane.f32.xlu0 %v2615_v56 }
0x1242   : > { %v2614_v57 = vpop.xlane.xlu0 %2613 }
0x1243   : > { %v2618_v0 = vmul.f32 0.125, %v2614_v57 }
0x1245   : > { %v2620_v58 = vsub.f32 %v2610_v51, %v2618_v0 }
0x1246   : > { %v2617_v59 = vpop.xlane.xlu0 %2616 }
0x1247   : > { %v2619_v60 = vmul.f32 0.125, %v2617_v59  ;;  %v2622_v61 = vmul.f32 %v2620_v58, %v2620_v58 }
0x1249   : > { %v2621_v62 = vsub.f32 %v2611_v55, %v2619_v60  ;;  %v2624_v63 = vsel %vm1152_vm2, %v2622_v61, 0.0 }
0x124a   : > { %2625 = vadd.xlane.f32.xlu0 %v2624_v63 }
0x124b   : > { %v2623_v1 = vmul.f32 %v2621_v62, %v2621_v62 }
0x124d   : > { %v2627_v2 = vsel %vm1152_vm2, %v2623_v1, 0.0 }
0x124e   : > { %2628 = vadd.xlane.f32.xlu0 %v2627_v2 }
0x12d7   : > { %v2626_v4 = vpop.xlane.xlu0 %2625 }
0x12d8   : > { %v2630_v5 = vmul.f32 0.125, %v2626_v4 }
0x12da   : > { %v2632_v7 = vadd.f32 1e-05, %v2630_v5 }
0x12db   : > { %v2629_v9 = vpop.xlane.xlu0 %2628 }
0x12dc   : > { %3139 = vrsqrt.f32 %v2632_v7  ;;  %v2631_v11 = vmul.f32 0.125, %v2629_v9 }
0x12de   : > { %v2633_v12 = vadd.f32 1e-05, %v2631_v11 }
0x12e0   : > { %3141 = vrsqrt.f32 %v2633_v12 }
0x12e6   : > { %v3140_v13 = vpop.eup %3139 }
0x12e7   : > { %v2636_v8 = vmul.f32 %v3140_v13, %v2620_v58 }
0x12e9   : > { %v2644_v16 = vmul.f32 %v2832_v14, %v2636_v8 }
0x12ea   : > { %v3142_v17 = vpop.eup %3141 }
0x12eb   : > { %v2652_v18 = vadd.f32 %v2833_v15, %v2644_v16  ;;  %v2637_v19 = vmul.f32 %v3142_v17, %v2621_v62 }
0x12ed   : > { %2654 = vst.msk [vmem:[%s1096_s2] sm:$0xff] %vm1152_vm2, %v2652_v18  ;;  %v2645_v10 = vmul.f32 %v2832_v14, %v2637_v19 }
0x12ef   : > { %v2653_v3 = vadd.f32 %v2833_v15, %v2645_v10 }
0x12f1   : > { %2655 = vst.msk [vmem:[%s1096_s2 + $0x8] sm:$0xff] %vm1152_vm2, %v2653_v3 }
0x12f2 PF: > { %s83_s22 = sadd.s32 1, %s3213_s22  }
0x12f3   : > { %p80_p11 = scmp.ge.s32.totalorder %s83_s22, 4  }
0x12f5   :  { %82 = sbr.rel (!%p80_p11) target bundleno = 63 (0x3f), region = 234 }
0x12fc   :  { %2677 = vsyncpa [#allocation3], 1 }
0x12fd   :  { %2679 = vsyncpa [#allocation3 + $0x1], 1 }
0x12fe   :  { %2680 = vsyncpa [#allocation5], 1 }

</bundles_post_ra>
